<compile_context>
chip_gen: v7x
topology: tpu7x:2x2x1
jax: 0.10.0
libtpu: 0.0.40
codegen_flags: <defaults>
</compile_context>

<pallas_src>
import functools

import jax
import jax.numpy as jnp
from jax import lax
from jax.experimental import pallas as pl
from jax.experimental.pallas import tpu as pltpu


def _round_up(x, m):
    return ((x + m - 1) // m) * m


def _self_attn_kernel(x_ref, wqkv_ref, wo_ref, o_ref, *, n_head, dh_p):
    """One batch element per grid step.

    x_ref    : (1, seq, hidden_p)
    wqkv_ref : (hidden_p, 3 * n_head * dh_p)  head-major, per-head lane-padded,
               Q block pre-scaled by 1/sqrt(d_head)
    wo_ref   : (n_head * dh_p, hidden_p)
    o_ref    : (1, seq, hidden_p)
    """
    seq = x_ref.shape[1]
    dt = x_ref.dtype                     # MXU input dtype (bf16 stays bf16)
    ndp = n_head * dh_p

    x = x_ref[0]                         # (seq, hidden_p)
    wqkv = wqkv_ref[...]                 # (hidden_p, 3*ndp)
    wo = wo_ref[...]                     # (ndp, hidden_p)

    # Fused Q/K/V projection; f32 accumulation on the MXU.
    qkv = jnp.dot(x, wqkv, preferred_element_type=jnp.float32).astype(dt)

    contract_last = (((1,), (1,)), ((), ()))   # contract d_head of both operands
    head_outs = []
    for h in range(n_head):                    # statically unrolled, small n_head
        lo = h * dh_p                          # 128-lane-aligned slab offsets
        qh = qkv[:, lo:lo + dh_p]                          # (seq, dh_p)
        kh = qkv[:, ndp + lo:ndp + lo + dh_p]              # (seq, dh_p)
        vh = qkv[:, 2 * ndp + lo:2 * ndp + lo + dh_p]      # (seq, dh_p)

        # scores[i, j] = sum_d q[i, d] * k[j, d]; padded d columns are exactly
        # zero (zero weight columns) so they contribute nothing.
        scores = lax.dot_general(qh, kh, contract_last,
                                 preferred_element_type=jnp.float32)
        m = jnp.max(scores, axis=-1, keepdims=True)
        e = jnp.exp(scores - m)
        probs = e / jnp.sum(e, axis=-1, keepdims=True)     # exact softmax

        head_outs.append(
            jnp.dot(probs.astype(dt), vh,
                    preferred_element_type=jnp.float32).astype(dt))

    # Collect all heads into one lane-aligned slab, then ONE output projection
    # (contraction K = n_head*dh_p instead of n_head separate K=d_head passes).
    attn_all = jnp.concatenate(head_outs, axis=-1)         # (seq, ndp)
    out = jnp.dot(attn_all, wo, preferred_element_type=jnp.float32)
    o_ref[0] = out.astype(o_ref.dtype)


def prepare_self_attn_params(wq, wkv, wo, *, n_head, d_head, dtype=None):
    """One-time weight preparation (do this at init time, NOT per forward call).

    Folds the softmax scale into Wq, fuses Q/K/V into a single (in, out)-layout
    matrix, and pads each per-head d_head slab to 128 lanes and the hidden dim
    to a 128 multiple so every kernel load/slice/matmul is lane-dense & aligned.
    """
    nd = n_head * d_head
    hidden = wq.shape[1]
    assert wq.shape == (nd, hidden)
    assert wkv.shape == (2 * nd, hidden)
    assert wo.shape == (hidden, nd)
    dt = dtype if dtype is not None else wq.dtype

    hidden_p = _round_up(hidden, 128)
    dh_p = _round_up(d_head, 128)
    ndp = n_head * dh_p

    scale = 1.0 / (d_head ** 0.5)
    wq_s = wq.astype(jnp.float32) * scale
    wk, wv = jnp.split(wkv.astype(jnp.float32), 2, axis=0)

    def head_major_in(w):
        # (nd, hidden) -> (hidden_p, n_head*dh_p): head-major, per-head padded,
        # pre-transposed to (input, output) so the kernel never transposes.
        w = w.reshape(n_head, d_head, hidden)
        w = jnp.pad(w, ((0, 0), (0, dh_p - d_head), (0, hidden_p - hidden)))
        return w.transpose(2, 0, 1).reshape(hidden_p, ndp)

    wqkv_hp = jnp.concatenate(
        [head_major_in(wq_s), head_major_in(wk), head_major_in(wv)],
        axis=1).astype(dt)                                  # (hidden_p, 3*ndp)

    wo_h = wo.astype(jnp.float32).T.reshape(n_head, d_head, hidden)
    wo_h = jnp.pad(wo_h, ((0, 0), (0, dh_p - d_head), (0, hidden_p - hidden)))
    wo_hp = wo_h.reshape(ndp, hidden_p).astype(dt)          # (ndp, hidden_p)

    return {"wqkv": wqkv_hp, "wo": wo_hp, "n_head": n_head, "d_head": d_head,
            "dh_p": dh_p, "hidden": hidden, "hidden_p": hidden_p}


def self_attn_forward(embeds, params):
    bsz, seq, hidden = embeds.shape
    assert hidden == params["hidden"]
    n_head = params["n_head"]
    dh_p = params["dh_p"]
    hidden_p = params["hidden_p"]
    ndp = n_head * dh_p
    wqkv, wo = params["wqkv"], params["wo"]

    # Pad only the hidden (lane) dim of the activations; weights were padded
    # once at init.
    pad = hidden_p - hidden
    x = jnp.pad(embeds, ((0, 0), (0, 0), (0, pad))) if pad else embeds

    itemsize = jnp.dtype(embeds.dtype).itemsize
    w_itemsize = jnp.dtype(wqkv.dtype).itemsize

    # VMEM budget: double-buffered x/out blocks + weights (1-2 buffers) + f32
    # intermediates (qkv, scores, head/collected outputs), with headroom.
    x_blk = seq * hidden_p * itemsize
    interm = (seq * 3 * ndp + 2 * seq * seq + 2 * seq * ndp + seq * hidden_p) * 4
    needed = 4 * x_blk + 2 * (wqkv.size + wo.size) * w_itemsize + 2 * interm
    vmem_limit = int(min(64 * 1024 * 1024, max(32 * 1024 * 1024, 2 * needed)))

    cost = pl.CostEstimate(
        flops=int(2 * bsz * seq * hidden_p * 3 * ndp          # QKV projection
                  + 4 * bsz * n_head * seq * seq * dh_p       # QK^T and P@V
                  + 2 * bsz * seq * ndp * hidden_p),          # output projection
        transcendentals=int(bsz * n_head * seq * seq),        # exp
        bytes_accessed=int(2 * bsz * seq * hidden_p * itemsize
                           + (wqkv.size + wo.size) * w_itemsize),
    )

    kernel = functools.partial(_self_attn_kernel, n_head=n_head, dh_p=dh_p)

    def call(single_buffer_weights):
        # Weights never change across the grid -> single buffering halves their
        # VMEM footprint.
        wkw = {"pipeline_mode": pl.Buffered(1)} if single_buffer_weights else {}
        return pl.pallas_call(
            kernel,
            out_shape=jax.ShapeDtypeStruct((bsz, seq, hidden_p), embeds.dtype),
            grid=(bsz,),
            in_specs=[
                pl.BlockSpec((1, seq, hidden_p), lambda b: (b, 0, 0)),
                pl.BlockSpec(wqkv.shape, lambda b: (0, 0), **wkw),
                pl.BlockSpec(wo.shape, lambda b: (0, 0), **wkw),
            ],
            out_specs=pl.BlockSpec((1, seq, hidden_p), lambda b: (b, 0, 0)),
            compiler_params=pltpu.CompilerParams(
                dimension_semantics=("parallel",),
                vmem_limit_bytes=vmem_limit),
            cost_estimate=cost,
        )(x, wqkv, wo)

    try:
        out_p = call(True)
    except Exception:
        # Fallback for Pallas builds that reject pipeline_mode / Buffered(1).
        out_p = call(False)

    return out_p[..., :hidden] if pad else out_p


def _xavier_uniform(key, shape, dtype=jnp.float32):
    # nn.Linear weight shape is (out_features, in_features)
    fan_out, fan_in = shape
    bound = (6.0 / (fan_in + fan_out)) ** 0.5
    return jax.random.uniform(key, shape, dtype=dtype, minval=-bound, maxval=bound)


def _reference(embeds, wq, wkv, wo, *, n_head, d_head):
    # Pure-JAX reference mirroring the PyTorch forward (eval mode).
    bsz, seq, hidden = embeds.shape
    scale = 1.0 / (d_head ** 0.5)
    head_q = embeds @ wq.T
    head_kv = embeds @ wkv.T
    head_k, head_v = jnp.split(head_kv, 2, axis=-1)
    head_q = head_q.reshape(bsz, seq, n_head, d_head)
    head_k = head_k.reshape(bsz, seq, n_head, d_head)
    head_v = head_v.reshape(bsz, seq, n_head, d_head)
    attn_score = jnp.einsum('bind,bjnd->ijbn', head_q, head_k) * scale
    attn_prob = jax.nn.softmax(attn_score, axis=1)
    attn_vec = jnp.einsum('ijbn,bjnd->bind', attn_prob, head_v)
    attn_vec = attn_vec.reshape(bsz, seq, n_head * d_head)
    return attn_vec @ wo.T


if __name__ == "__main__":
    n_head, d_head, hidden, dropout_prob = 4, 8, 32, 0.0
    bsz, seq = 2, 8

    key = jax.random.PRNGKey(0)
    k_x, k_q, k_kv, k_o = jax.random.split(key, 4)

    embeds = jax.random.normal(k_x, (bsz, seq, hidden), dtype=jnp.float32)
    wq = _xavier_uniform(k_q, (n_head * d_head, hidden))
    wkv = _xavier_uniform(k_kv, (2 * n_head * d_head, hidden))
    wo = _xavier_uniform(k_o, (hidden, n_head * d_head))

    # One-time weight preparation (init-time), then the forward call.
    params = prepare_self_attn_params(wq, wkv, wo, n_head=n_head, d_head=d_head)
    out = self_attn_forward(embeds, params)
    out = jax.block_until_ready(out)

    ref = _reference(embeds, wq, wkv, wo, n_head=n_head, d_head=d_head)
    assert out.shape == (bsz, seq, hidden)
    err = float(jnp.max(jnp.abs(out - ref)))
    assert jnp.allclose(out, ref, atol=1e-3, rtol=1e-3), err

    print("KERNEL_OK")
</pallas_src>

<mosaic_0001>
module attributes {stable_mosaic.version = 11 : i64} {
  func.func @_self_attn_kernel(%arg0: i32, %arg1: memref<1x8x128xf32, #tpu.memory_space<vmem>>, %arg2: memref<128x1536xf32, #tpu.memory_space<vmem>>, %arg3: memref<512x128xf32, #tpu.memory_space<vmem>>, %arg4: memref<1x8x128xf32, #tpu.memory_space<vmem>>) attributes {dimension_semantics = [#tpu.dimension_semantics<parallel>], iteration_bounds = array<i64: 2>, scalar_prefetch = 0 : i64, scratch_operands = 0 : i64, tpu.core_type = #tpu.core_type<tc>, window_params = [{transform_indices = @transform_0, window_bounds = array<i64: 1, 8, 128>}, {pipeline_mode = #tpu.pipeline_mode<synchronous>, transform_indices = @transform_1, window_bounds = array<i64: 128, 1536>}, {pipeline_mode = #tpu.pipeline_mode<synchronous>, transform_indices = @transform_2, window_bounds = array<i64: 512, 128>}, {transform_indices = @transform_3, window_bounds = array<i64: 1, 8, 128>}]} {
    %c0 = arith.constant 0 : index
    %c0_0 = arith.constant 0 : index
    %c0_1 = arith.constant 0 : index
    %0 = vector.load %arg1[%c0, %c0_0, %c0_1] : memref<1x8x128xf32, #tpu.memory_space<vmem>>, vector<1x8x128xf32>
    %1 = vector.shape_cast %0 : vector<1x8x128xf32> to vector<8x128xf32>
    %c0_2 = arith.constant 0 : index
    %c0_3 = arith.constant 0 : index
    %2 = vector.load %arg2[%c0_2, %c0_3] : memref<128x1536xf32, #tpu.memory_space<vmem>>, vector<128x1536xf32>
    %c0_4 = arith.constant 0 : index
    %c0_5 = arith.constant 0 : index
    %3 = vector.load %arg3[%c0_4, %c0_5] : memref<512x128xf32, #tpu.memory_space<vmem>>, vector<512x128xf32>
    %cst = arith.constant dense<0.000000e+00> : vector<8x1536xf32>
    %4 = tpu.matmul %1, %2, %cst {dimension_numbers = #tpu.dot_dimension_numbers<[1], [0], [0], [1], [0, 0, 1, 1], [], []>} : vector<8x128xf32>, vector<128x1536xf32>, vector<8x1536xf32> -> vector<8x1536xf32>
    %5 = vector.extract_strided_slice %4 {offsets = [0, 0], sizes = [8, 128], strides = [1, 1]} : vector<8x1536xf32> to vector<8x128xf32>
    %6 = vector.extract_strided_slice %4 {offsets = [0, 512], sizes = [8, 128], strides = [1, 1]} : vector<8x1536xf32> to vector<8x128xf32>
    %7 = vector.extract_strided_slice %4 {offsets = [0, 1024], sizes = [8, 128], strides = [1, 1]} : vector<8x1536xf32> to vector<8x128xf32>
    %cst_6 = arith.constant dense<0.000000e+00> : vector<8x8xf32>
    %8 = tpu.matmul %5, %6, %cst_6 {dimension_numbers = #tpu.dot_dimension_numbers<[1], [1], [0], [0], [0, 0, 1, 0], [], []>} : vector<8x128xf32>, vector<8x128xf32>, vector<8x8xf32> -> vector<8x8xf32>
    %cst_7 = arith.constant dense<0xFF800000> : vector<8xf32>
    %9 = vector.multi_reduction <maximumf>, %8, %cst_7 [1] : vector<8x8xf32> to vector<8xf32>
    %10 = vector.shape_cast %9 : vector<8xf32> to vector<8x1xf32>
    %11 = vector.broadcast %10 : vector<8x1xf32> to vector<8x8xf32>
    %12 = arith.subf %8, %11 : vector<8x8xf32>
    %13 = math.exp %12 : vector<8x8xf32>
    %cst_8 = arith.constant dense<0.000000e+00> : vector<8xf32>
    %14 = vector.multi_reduction <add>, %13, %cst_8 [1] : vector<8x8xf32> to vector<8xf32>
    %15 = vector.shape_cast %14 : vector<8xf32> to vector<8x1xf32>
    %16 = vector.broadcast %15 : vector<8x1xf32> to vector<8x8xf32>
    %17 = arith.divf %13, %16 : vector<8x8xf32>
    %cst_9 = arith.constant dense<0.000000e+00> : vector<8x128xf32>
    %18 = tpu.matmul %17, %7, %cst_9 {dimension_numbers = #tpu.dot_dimension_numbers<[1], [0], [0], [1], [0, 0, 1, 1], [], []>} : vector<8x8xf32>, vector<8x128xf32>, vector<8x128xf32> -> vector<8x128xf32>
    %19 = vector.extract_strided_slice %4 {offsets = [0, 128], sizes = [8, 128], strides = [1, 1]} : vector<8x1536xf32> to vector<8x128xf32>
    %20 = vector.extract_strided_slice %4 {offsets = [0, 640], sizes = [8, 128], strides = [1, 1]} : vector<8x1536xf32> to vector<8x128xf32>
    %21 = vector.extract_strided_slice %4 {offsets = [0, 1152], sizes = [8, 128], strides = [1, 1]} : vector<8x1536xf32> to vector<8x128xf32>
    %cst_10 = arith.constant dense<0.000000e+00> : vector<8x8xf32>
    %22 = tpu.matmul %19, %20, %cst_10 {dimension_numbers = #tpu.dot_dimension_numbers<[1], [1], [0], [0], [0, 0, 1, 0], [], []>} : vector<8x128xf32>, vector<8x128xf32>, vector<8x8xf32> -> vector<8x8xf32>
    %cst_11 = arith.constant dense<0xFF800000> : vector<8xf32>
    %23 = vector.multi_reduction <maximumf>, %22, %cst_11 [1] : vector<8x8xf32> to vector<8xf32>
    %24 = vector.shape_cast %23 : vector<8xf32> to vector<8x1xf32>
    %25 = vector.broadcast %24 : vector<8x1xf32> to vector<8x8xf32>
    %26 = arith.subf %22, %25 : vector<8x8xf32>
    %27 = math.exp %26 : vector<8x8xf32>
    %cst_12 = arith.constant dense<0.000000e+00> : vector<8xf32>
    %28 = vector.multi_reduction <add>, %27, %cst_12 [1] : vector<8x8xf32> to vector<8xf32>
    %29 = vector.shape_cast %28 : vector<8xf32> to vector<8x1xf32>
    %30 = vector.broadcast %29 : vector<8x1xf32> to vector<8x8xf32>
    %31 = arith.divf %27, %30 : vector<8x8xf32>
    %cst_13 = arith.constant dense<0.000000e+00> : vector<8x128xf32>
    %32 = tpu.matmul %31, %21, %cst_13 {dimension_numbers = #tpu.dot_dimension_numbers<[1], [0], [0], [1], [0, 0, 1, 1], [], []>} : vector<8x8xf32>, vector<8x128xf32>, vector<8x128xf32> -> vector<8x128xf32>
    %33 = vector.extract_strided_slice %4 {offsets = [0, 256], sizes = [8, 128], strides = [1, 1]} : vector<8x1536xf32> to vector<8x128xf32>
    %34 = vector.extract_strided_slice %4 {offsets = [0, 768], sizes = [8, 128], strides = [1, 1]} : vector<8x1536xf32> to vector<8x128xf32>
    %35 = vector.extract_strided_slice %4 {offsets = [0, 1280], sizes = [8, 128], strides = [1, 1]} : vector<8x1536xf32> to vector<8x128xf32>
    %cst_14 = arith.constant dense<0.000000e+00> : vector<8x8xf32>
    %36 = tpu.matmul %33, %34, %cst_14 {dimension_numbers = #tpu.dot_dimension_numbers<[1], [1], [0], [0], [0, 0, 1, 0], [], []>} : vector<8x128xf32>, vector<8x128xf32>, vector<8x8xf32> -> vector<8x8xf32>
    %cst_15 = arith.constant dense<0xFF800000> : vector<8xf32>
    %37 = vector.multi_reduction <maximumf>, %36, %cst_15 [1] : vector<8x8xf32> to vector<8xf32>
    %38 = vector.shape_cast %37 : vector<8xf32> to vector<8x1xf32>
    %39 = vector.broadcast %38 : vector<8x1xf32> to vector<8x8xf32>
    %40 = arith.subf %36, %39 : vector<8x8xf32>
    %41 = math.exp %40 : vector<8x8xf32>
    %cst_16 = arith.constant dense<0.000000e+00> : vector<8xf32>
    %42 = vector.multi_reduction <add>, %41, %cst_16 [1] : vector<8x8xf32> to vector<8xf32>
    %43 = vector.shape_cast %42 : vector<8xf32> to vector<8x1xf32>
    %44 = vector.broadcast %43 : vector<8x1xf32> to vector<8x8xf32>
    %45 = arith.divf %41, %44 : vector<8x8xf32>
    %cst_17 = arith.constant dense<0.000000e+00> : vector<8x128xf32>
    %46 = tpu.matmul %45, %35, %cst_17 {dimension_numbers = #tpu.dot_dimension_numbers<[1], [0], [0], [1], [0, 0, 1, 1], [], []>} : vector<8x8xf32>, vector<8x128xf32>, vector<8x128xf32> -> vector<8x128xf32>
    %47 = vector.extract_strided_slice %4 {offsets = [0, 384], sizes = [8, 128], strides = [1, 1]} : vector<8x1536xf32> to vector<8x128xf32>
    %48 = vector.extract_strided_slice %4 {offsets = [0, 896], sizes = [8, 128], strides = [1, 1]} : vector<8x1536xf32> to vector<8x128xf32>
    %49 = vector.extract_strided_slice %4 {offsets = [0, 1408], sizes = [8, 128], strides = [1, 1]} : vector<8x1536xf32> to vector<8x128xf32>
    %cst_18 = arith.constant dense<0.000000e+00> : vector<8x8xf32>
    %50 = tpu.matmul %47, %48, %cst_18 {dimension_numbers = #tpu.dot_dimension_numbers<[1], [1], [0], [0], [0, 0, 1, 0], [], []>} : vector<8x128xf32>, vector<8x128xf32>, vector<8x8xf32> -> vector<8x8xf32>
    %cst_19 = arith.constant dense<0xFF800000> : vector<8xf32>
    %51 = vector.multi_reduction <maximumf>, %50, %cst_19 [1] : vector<8x8xf32> to vector<8xf32>
    %52 = vector.shape_cast %51 : vector<8xf32> to vector<8x1xf32>
    %53 = vector.broadcast %52 : vector<8x1xf32> to vector<8x8xf32>
    %54 = arith.subf %50, %53 : vector<8x8xf32>
    %55 = math.exp %54 : vector<8x8xf32>
    %cst_20 = arith.constant dense<0.000000e+00> : vector<8xf32>
    %56 = vector.multi_reduction <add>, %55, %cst_20 [1] : vector<8x8xf32> to vector<8xf32>
    %57 = vector.shape_cast %56 : vector<8xf32> to vector<8x1xf32>
    %58 = vector.broadcast %57 : vector<8x1xf32> to vector<8x8xf32>
    %59 = arith.divf %55, %58 : vector<8x8xf32>
    %cst_21 = arith.constant dense<0.000000e+00> : vector<8x128xf32>
    %60 = tpu.matmul %59, %49, %cst_21 {dimension_numbers = #tpu.dot_dimension_numbers<[1], [0], [0], [1], [0, 0, 1, 1], [], []>} : vector<8x8xf32>, vector<8x128xf32>, vector<8x128xf32> -> vector<8x128xf32>
    %61 = tpu.concatenate %18, %32, %46, %60 in 1 : vector<8x128xf32>, vector<8x128xf32>, vector<8x128xf32>, vector<8x128xf32> -> vector<8x512xf32>
    %cst_22 = arith.constant dense<0.000000e+00> : vector<8x128xf32>
    %62 = tpu.matmul %61, %3, %cst_22 {dimension_numbers = #tpu.dot_dimension_numbers<[1], [0], [0], [1], [0, 0, 1, 1], [], []>} : vector<8x512xf32>, vector<512x128xf32>, vector<8x128xf32> -> vector<8x128xf32>
    %c0_23 = arith.constant 0 : index
    %c0_24 = arith.constant 0 : index
    %c0_25 = arith.constant 0 : index
    %63 = vector.load %arg4[%c0_23, %c0_24, %c0_25] : memref<1x8x128xf32, #tpu.memory_space<vmem>>, vector<1x8x128xf32>
    %64 = vector.shape_cast %63 : vector<1x8x128xf32> to vector<8x128xf32>
    %65 = vector.shape_cast %62 : vector<8x128xf32> to vector<1x8x128xf32>
    tpu.vector_store %arg4[%c0_23, %c0_24, %c0_25], %65 {strides = array<i32>} : memref<1x8x128xf32, #tpu.memory_space<vmem>>, vector<1x8x128xf32>,
    return
  }
  func.func @transform_0(%arg0: i32) -> (i32, i32, i32) {
    %c0_i32 = arith.constant 0 : i32
    %c0_i32_0 = arith.constant 0 : i32
    %c0_i32_1 = arith.constant 0 : i32
    return %arg0, %c0_i32, %c0_i32_0 : i32, i32, i32
  }
  func.func @transform_1(%arg0: i32) -> (i32, i32) {
    %c0_i32 = arith.constant 0 : i32
    %c0_i32_0 = arith.constant 0 : i32
    %c0_i32_1 = arith.constant 0 : i32
    return %c0_i32, %c0_i32_0 : i32, i32
  }
  func.func @transform_2(%arg0: i32) -> (i32, i32) {
    %c0_i32 = arith.constant 0 : i32
    %c0_i32_0 = arith.constant 0 : i32
    %c0_i32_1 = arith.constant 0 : i32
    return %c0_i32, %c0_i32_0 : i32, i32
  }
  func.func @transform_3(%arg0: i32) -> (i32, i32, i32) {
    %c0_i32 = arith.constant 0 : i32
    %c0_i32_0 = arith.constant 0 : i32
    %c0_i32_1 = arith.constant 0 : i32
    return %arg0, %c0_i32, %c0_i32_0 : i32, i32, i32
  }
}

module attributes {stable_mosaic.version = 11 : i64} {
  func.func @_self_attn_kernel(%arg0: i32, %arg1: memref<1x8x128xf32, #tpu.memory_space<vmem>>, %arg2: memref<128x1536xf32, #tpu.memory_space<vmem>>, %arg3: memref<512x128xf32, #tpu.memory_space<vmem>>, %arg4: memref<1x8x128xf32, #tpu.memory_space<vmem>>) attributes {dimension_semantics = [#tpu.dimension_semantics<parallel>], iteration_bounds = array<i64: 2>, scalar_prefetch = 0 : i64, scratch_operands = 0 : i64, tpu.core_type = #tpu.core_type<tc>, window_params = [{transform_indices = @transform_0, window_bounds = array<i64: 1, 8, 128>}, {pipeline_mode = #tpu.pipeline_mode<synchronous>, transform_indices = @transform_1, window_bounds = array<i64: 128, 1536>}, {pipeline_mode = #tpu.pipeline_mode<synchronous>, transform_indices = @transform_2, window_bounds = array<i64: 512, 128>}, {transform_indices = @transform_3, window_bounds = array<i64: 1, 8, 128>}]} {
    %c0 = arith.constant 0 : index
    %c0_0 = arith.constant 0 : index
    %c0_1 = arith.constant 0 : index
    %0 = vector.load %arg1[%c0, %c0_0, %c0_1] : memref<1x8x128xf32, #tpu.memory_space<vmem>>, vector<1x8x128xf32>
    %1 = vector.shape_cast %0 : vector<1x8x128xf32> to vector<8x128xf32>
    %c0_2 = arith.constant 0 : index
    %c0_3 = arith.constant 0 : index
    %2 = vector.load %arg2[%c0_2, %c0_3] : memref<128x1536xf32, #tpu.memory_space<vmem>>, vector<128x1536xf32>
    %c0_4 = arith.constant 0 : index
    %c0_5 = arith.constant 0 : index
    %3 = vector.load %arg3[%c0_4, %c0_5] : memref<512x128xf32, #tpu.memory_space<vmem>>, vector<512x128xf32>
    %cst = arith.constant dense<0.000000e+00> : vector<8x1536xf32>
    %4 = tpu.matmul %1, %2, %cst {dimension_numbers = #tpu.dot_dimension_numbers<[1], [0], [0], [1], [0, 0, 1, 1], [], []>} : vector<8x128xf32>, vector<128x1536xf32>, vector<8x1536xf32> -> vector<8x1536xf32>
    %5 = vector.extract_strided_slice %4 {offsets = [0, 0], sizes = [8, 128], strides = [1, 1]} : vector<8x1536xf32> to vector<8x128xf32>
    %6 = vector.extract_strided_slice %4 {offsets = [0, 512], sizes = [8, 128], strides = [1, 1]} : vector<8x1536xf32> to vector<8x128xf32>
    %7 = vector.extract_strided_slice %4 {offsets = [0, 1024], sizes = [8, 128], strides = [1, 1]} : vector<8x1536xf32> to vector<8x128xf32>
    %cst_6 = arith.constant dense<0.000000e+00> : vector<8x8xf32>
    %8 = tpu.matmul %5, %6, %cst_6 {dimension_numbers = #tpu.dot_dimension_numbers<[1], [1], [0], [0], [0, 0, 1, 0], [], []>} : vector<8x128xf32>, vector<8x128xf32>, vector<8x8xf32> -> vector<8x8xf32>
    %cst_7 = arith.constant dense<0xFF800000> : vector<8xf32>
    %9 = vector.multi_reduction <maximumf>, %8, %cst_7 [1] : vector<8x8xf32> to vector<8xf32>
    %10 = vector.shape_cast %9 : vector<8xf32> to vector<8x1xf32>
    %11 = vector.broadcast %10 : vector<8x1xf32> to vector<8x8xf32>
    %12 = arith.subf %8, %11 : vector<8x8xf32>
    %13 = math.exp %12 : vector<8x8xf32>
    %cst_8 = arith.constant dense<0.000000e+00> : vector<8xf32>
    %14 = vector.multi_reduction <add>, %13, %cst_8 [1] : vector<8x8xf32> to vector<8xf32>
    %15 = vector.shape_cast %14 : vector<8xf32> to vector<8x1xf32>
    %16 = vector.broadcast %15 : vector<8x1xf32> to vector<8x8xf32>
    %17 = arith.divf %13, %16 : vector<8x8xf32>
    %cst_9 = arith.constant dense<0.000000e+00> : vector<8x128xf32>
    %18 = tpu.matmul %17, %7, %cst_9 {dimension_numbers = #tpu.dot_dimension_numbers<[1], [0], [0], [1], [0, 0, 1, 1], [], []>} : vector<8x8xf32>, vector<8x128xf32>, vector<8x128xf32> -> vector<8x128xf32>
    %19 = vector.extract_strided_slice %4 {offsets = [0, 128], sizes = [8, 128], strides = [1, 1]} : vector<8x1536xf32> to vector<8x128xf32>
    %20 = vector.extract_strided_slice %4 {offsets = [0, 640], sizes = [8, 128], strides = [1, 1]} : vector<8x1536xf32> to vector<8x128xf32>
    %21 = vector.extract_strided_slice %4 {offsets = [0, 1152], sizes = [8, 128], strides = [1, 1]} : vector<8x1536xf32> to vector<8x128xf32>
    %cst_10 = arith.constant dense<0.000000e+00> : vector<8x8xf32>
    %22 = tpu.matmul %19, %20, %cst_10 {dimension_numbers = #tpu.dot_dimension_numbers<[1], [1], [0], [0], [0, 0, 1, 0], [], []>} : vector<8x128xf32>, vector<8x128xf32>, vector<8x8xf32> -> vector<8x8xf32>
    %cst_11 = arith.constant dense<0xFF800000> : vector<8xf32>
    %23 = vector.multi_reduction <maximumf>, %22, %cst_11 [1] : vector<8x8xf32> to vector<8xf32>
    %24 = vector.shape_cast %23 : vector<8xf32> to vector<8x1xf32>
    %25 = vector.broadcast %24 : vector<8x1xf32> to vector<8x8xf32>
    %26 = arith.subf %22, %25 : vector<8x8xf32>
    %27 = math.exp %26 : vector<8x8xf32>
    %cst_12 = arith.constant dense<0.000000e+00> : vector<8xf32>
    %28 = vector.multi_reduction <add>, %27, %cst_12 [1] : vector<8x8xf32> to vector<8xf32>
    %29 = vector.shape_cast %28 : vector<8xf32> to vector<8x1xf32>
    %30 = vector.broadcast %29 : vector<8x1xf32> to vector<8x8xf32>
    %31 = arith.divf %27, %30 : vector<8x8xf32>
    %cst_13 = arith.constant dense<0.000000e+00> : vector<8x128xf32>
    %32 = tpu.matmul %31, %21, %cst_13 {dimension_numbers = #tpu.dot_dimension_numbers<[1], [0], [0], [1], [0, 0, 1, 1], [], []>} : vector<8x8xf32>, vector<8x128xf32>, vector<8x128xf32> -> vector<8x128xf32>
    %33 = vector.extract_strided_slice %4 {offsets = [0, 256], sizes = [8, 128], strides = [1, 1]} : vector<8x1536xf32> to vector<8x128xf32>
    %34 = vector.extract_strided_slice %4 {offsets = [0, 768], sizes = [8, 128], strides = [1, 1]} : vector<8x1536xf32> to vector<8x128xf32>
    %35 = vector.extract_strided_slice %4 {offsets = [0, 1280], sizes = [8, 128], strides = [1, 1]} : vector<8x1536xf32> to vector<8x128xf32>
    %cst_14 = arith.constant dense<0.000000e+00> : vector<8x8xf32>
    %36 = tpu.matmul %33, %34, %cst_14 {dimension_numbers = #tpu.dot_dimension_numbers<[1], [1], [0], [0], [0, 0, 1, 0], [], []>} : vector<8x128xf32>, vector<8x128xf32>, vector<8x8xf32> -> vector<8x8xf32>
    %cst_15 = arith.constant dense<0xFF800000> : vector<8xf32>
    %37 = vector.multi_reduction <maximumf>, %36, %cst_15 [1] : vector<8x8xf32> to vector<8xf32>
    %38 = vector.shape_cast %37 : vector<8xf32> to vector<8x1xf32>
    %39 = vector.broadcast %38 : vector<8x1xf32> to vector<8x8xf32>
    %40 = arith.subf %36, %39 : vector<8x8xf32>
    %41 = math.exp %40 : vector<8x8xf32>
    %cst_16 = arith.constant dense<0.000000e+00> : vector<8xf32>
    %42 = vector.multi_reduction <add>, %41, %cst_16 [1] : vector<8x8xf32> to vector<8xf32>
    %43 = vector.shape_cast %42 : vector<8xf32> to vector<8x1xf32>
    %44 = vector.broadcast %43 : vector<8x1xf32> to vector<8x8xf32>
    %45 = arith.divf %41, %44 : vector<8x8xf32>
    %cst_17 = arith.constant dense<0.000000e+00> : vector<8x128xf32>
    %46 = tpu.matmul %45, %35, %cst_17 {dimension_numbers = #tpu.dot_dimension_numbers<[1], [0], [0], [1], [0, 0, 1, 1], [], []>} : vector<8x8xf32>, vector<8x128xf32>, vector<8x128xf32> -> vector<8x128xf32>
    %47 = vector.extract_strided_slice %4 {offsets = [0, 384], sizes = [8, 128], strides = [1, 1]} : vector<8x1536xf32> to vector<8x128xf32>
    %48 = vector.extract_strided_slice %4 {offsets = [0, 896], sizes = [8, 128], strides = [1, 1]} : vector<8x1536xf32> to vector<8x128xf32>
    %49 = vector.extract_strided_slice %4 {offsets = [0, 1408], sizes = [8, 128], strides = [1, 1]} : vector<8x1536xf32> to vector<8x128xf32>
    %cst_18 = arith.constant dense<0.000000e+00> : vector<8x8xf32>
    %50 = tpu.matmul %47, %48, %cst_18 {dimension_numbers = #tpu.dot_dimension_numbers<[1], [1], [0], [0], [0, 0, 1, 0], [], []>} : vector<8x128xf32>, vector<8x128xf32>, vector<8x8xf32> -> vector<8x8xf32>
    %cst_19 = arith.constant dense<0xFF800000> : vector<8xf32>
    %51 = vector.multi_reduction <maximumf>, %50, %cst_19 [1] : vector<8x8xf32> to vector<8xf32>
    %52 = vector.shape_cast %51 : vector<8xf32> to vector<8x1xf32>
    %53 = vector.broadcast %52 : vector<8x1xf32> to vector<8x8xf32>
    %54 = arith.subf %50, %53 : vector<8x8xf32>
    %55 = math.exp %54 : vector<8x8xf32>
    %cst_20 = arith.constant dense<0.000000e+00> : vector<8xf32>
    %56 = vector.multi_reduction <add>, %55, %cst_20 [1] : vector<8x8xf32> to vector<8xf32>
    %57 = vector.shape_cast %56 : vector<8xf32> to vector<8x1xf32>
    %58 = vector.broadcast %57 : vector<8x1xf32> to vector<8x8xf32>
    %59 = arith.divf %55, %58 : vector<8x8xf32>
    %cst_21 = arith.constant dense<0.000000e+00> : vector<8x128xf32>
    %60 = tpu.matmul %59, %49, %cst_21 {dimension_numbers = #tpu.dot_dimension_numbers<[1], [0], [0], [1], [0, 0, 1, 1], [], []>} : vector<8x8xf32>, vector<8x128xf32>, vector<8x128xf32> -> vector<8x128xf32>
    %61 = tpu.concatenate %18, %32, %46, %60 in 1 : vector<8x128xf32>, vector<8x128xf32>, vector<8x128xf32>, vector<8x128xf32> -> vector<8x512xf32>
    %cst_22 = arith.constant dense<0.000000e+00> : vector<8x128xf32>
    %62 = tpu.matmul %61, %3, %cst_22 {dimension_numbers = #tpu.dot_dimension_numbers<[1], [0], [0], [1], [0, 0, 1, 1], [], []>} : vector<8x512xf32>, vector<512x128xf32>, vector<8x128xf32> -> vector<8x128xf32>
    %c0_23 = arith.constant 0 : index
    %c0_24 = arith.constant 0 : index
    %c0_25 = arith.constant 0 : index
    %63 = vector.load %arg4[%c0_23, %c0_24, %c0_25] : memref<1x8x128xf32, #tpu.memory_space<vmem>>, vector<1x8x128xf32>
    %64 = vector.shape_cast %63 : vector<1x8x128xf32> to vector<8x128xf32>
    %65 = vector.shape_cast %62 : vector<8x128xf32> to vector<1x8x128xf32>
    tpu.vector_store %arg4[%c0_23, %c0_24, %c0_25], %65 {strides = array<i32>} : memref<1x8x128xf32, #tpu.memory_space<vmem>>, vector<1x8x128xf32>,
    return
  }
  func.func @transform_0(%arg0: i32) -> (i32, i32, i32) {
    %c0_i32 = arith.constant 0 : i32
    %c0_i32_0 = arith.constant 0 : i32
    %c0_i32_1 = arith.constant 0 : i32
    return %arg0, %c0_i32, %c0_i32_0 : i32, i32, i32
  }
  func.func @transform_1(%arg0: i32) -> (i32, i32) {
    %c0_i32 = arith.constant 0 : i32
    %c0_i32_0 = arith.constant 0 : i32
    %c0_i32_1 = arith.constant 0 : i32
    return %c0_i32, %c0_i32_0 : i32, i32
  }
  func.func @transform_2(%arg0: i32) -> (i32, i32) {
    %c0_i32 = arith.constant 0 : i32
    %c0_i32_0 = arith.constant 0 : i32
    %c0_i32_1 = arith.constant 0 : i32
    return %c0_i32, %c0_i32_0 : i32, i32
  }
  func.func @transform_3(%arg0: i32) -> (i32, i32, i32) {
    %c0_i32 = arith.constant 0 : i32
    %c0_i32_0 = arith.constant 0 : i32
    %c0_i32_1 = arith.constant 0 : i32
    return %arg0, %c0_i32, %c0_i32_0 : i32, i32, i32
  }
}

</mosaic_0001>

<bundles_post_ra>
// kernel: tpu_custom_call.1
= control target key start
LH: loop header
LB: loop body
LE: loop exit
PB: predicated region body
PF: predicated region fallthrough
CT: control target
= control target key end

     0   :  { %8 = vsyncpa [#allocation3], 0  ;;  %s2749_s0 = inlined_call_operand.hbm [shape: f32[2,8,128], index: 0, kind: input, shape index: {}]   ;;  %s2750_s1 = inlined_call_operand.hbm [shape: f32[128,1536], index: 1, kind: input, shape index: {}]   ;;  %s2751_s2 = inlined_call_operand.hbm [shape: f32[512,128], index: 2, kind: input, shape index: {}]   ;;  %s2752_s3 = inlined_call_operand.hbm [shape: f32[2,8,128], index: 3, kind: output, shape index: {}]  }
   0x1   :  { %10 = vsyncpa [#allocation3 + $0x1], 0 }
   0x2   :  { %11 = vsyncpa [#allocation6], 0 }
   0x3   :  { %12 = vsyncpa [#allocation4], 0 }
   0x4   :  { %14 = vsyncpa [#allocation4 + $0x1], 0  ;;  %s2438_s12 = smov 0   ;;  %s2440_s13 = smov 0  }
   0x5   :  { %s2442_s14 = smov 0   ;;  %s2444_s15 = smov 0  }
   0x6 LB: > { %s2459_s16 = sadd.s32 4294967295, %s2406_s15   ;;  %s1759_s17 = sadd.s32 4294967294, %s2406_s15   ;;  %s2406_s15 = sphi %s2444_s15, %s2772_s15   ;;  %s2402_s14 = sphi %s2442_s14, %s2771_s14   ;;  %s2398_s13 = sphi %s2440_s13, %s2770_s13   ;;  %s2394_s12 = sphi %s2438_s12, %s2769_s12  }
   0x7   : > { %p40_p0 = scmp.ne.s32.totalorder %s2398_s13, %s2394_s12  ;;  %p2753_p1 = scmp.eq.s32.totalorder %s2459_s16, 0 }
   0x8   : > { %p112_p3 = scmp.eq.s32.totalorder %s1759_s17, 1  ;;  %p1760_p5 = scmp.ge.s32.totalorder %s2406_s15, 1 }
   0x9   : > { %p2468_p4 = por %p2753_p1, %p40_p0  ;;  %p119_p7 = scmp.lt.s32.totalorder %s2406_s15, 3 }
   0xa   : > { %p2473_p6 = por %p112_p3, %p40_p0  ;;  %s2408_s21 = smov [#allocation5]  }
   0xb   : > { %s2756_s18 = scalar_select %p2468_p4, 1, 0 }
   0xc   : > { %s2757_s19 = scalar_select %p2473_p6, 1, 0 }
   0xd   : > { %p2478_p8 = pnand %p1760_p5, %p119_p7  ;;  %s131_s22 = sshll.u32 %s2408_s21, 4  ;;  %s2482_s22 = int_to_ptr.vmem [resolvable:$true] %s131_s22 }
   0xe   : > { %s2409_s24 = smov [#allocation7]   ;;  %s2250_s28 = scalar_lea.hbm %s2750_s1, 24576 }
   0xf   : > { %p2173_p9 = pneg %p2478_p8  ;;  %s144_s25 = sshll.u32 %s2409_s24, 4  ;;  %s2493_s25 = int_to_ptr.vmem [resolvable:$true] %s144_s25 }
  0x10   : > { %p2251_p12 = scmp.ne.s32.totalorder %s2750_s1, %s2250_s28  ;;  %p2257_p5 = scmp.lt.u32.totalorder %s2250_s28, %s2750_s1 }
  0x11   : > { %p2489_p11 = pnand %p2173_p9, %p2753_p1 }
  0x13   : > { %p2252_p13 = pneg %p2489_p11 }
  0x15   : > { %p2253_p0 = pnand %p2252_p13, %p2251_p12 }
  0x17   : > { %p2254_p3 = pneg %p2253_p0 }
  0x19   : > { %p2259_p7 = pnand %p2257_p5, %p2254_p3 }
  0x1b   : > { %2262 = shalt.err (!%p2259_p7)
}
  0x1c   : > { %s2263_s6 = scalar_lea.vmem %s2482_s22, 24576  ;;  %p2271_p2 = scmp.lt.s32.totalorder %s2482_s22, %s2482_s22 }
  0x1d   : > { %p2264_p9 = scmp.ne.s32.totalorder %s2482_s22, %s2263_s6  ;;  %p2272_p12 = scmp.lt.s32.totalorder %s2263_s6, %s2263_s6 }
  0x1f   : > { %p2266_p10 = pnand %p2264_p9, %p2252_p13  ;;  %p2273_p0 = por %p2272_p12, %p2271_p2 }
  0x21   : > { %p2267_p1 = pneg %p2266_p10 }
  0x23   : > { %p2274_p6 = pnand %p2273_p0, %p2267_p1 }
  0x25   : > { %2277 = shalt.err (!%p2274_p6)
}
  0x26   : > { %s2410_s7 = smov 1536   ;;  %s2411_s8 = smov 96  }
  0x27   : > { %2176 = dma.hbm_to_vmem [thread:$0]  (!%p2489_p11), %s2750_s1, 24576, %s2482_s22, [#allocation6], %s2410_s7, %s2410_s7, %s2411_s8  }
  0x28   : > { %s2278_s21 = scalar_lea.hbm %s2751_s2, 8192 }
  0x29   : > { %p2279_p2 = scmp.ne.s32.totalorder %s2751_s2, %s2278_s21  ;;  %p2285_p10 = scmp.lt.u32.totalorder %s2278_s21, %s2751_s2 }
  0x2b   : > { %p2281_p1 = pnand %p2279_p2, %p2252_p13 }
  0x2d   : > { %p2282_p6 = pneg %p2281_p1 }
  0x2f   : > { %p2287_p3 = pnand %p2285_p10, %p2282_p6 }
  0x31   : > { %2290 = shalt.err (!%p2287_p3)
}
  0x32   : > { %s2291_s22 = scalar_lea.vmem %s2493_s25, 8192  ;;  %p2299_p12 = scmp.lt.s32.totalorder %s2493_s25, %s2493_s25 }
  0x33   : > { %p2292_p5 = scmp.ne.s32.totalorder %s2493_s25, %s2291_s22  ;;  %p2300_p0 = scmp.lt.s32.totalorder %s2291_s22, %s2291_s22 }
  0x35   : > { %p2294_p7 = pnand %p2292_p5, %p2252_p13  ;;  %p2301_p2 = por %p2300_p0, %p2299_p12 }
  0x37   : > { %p2295_p9 = pneg %p2294_p7 }
  0x39   : > { %p2302_p1 = pnand %p2301_p2, %p2295_p9 }
  0x3b   : > { %2305 = shalt.err (!%p2302_p1)
}
  0x3c   : > { %s2412_s29 = smov 128   ;;  %s2413_s30 = smov 8  }
  0x3d   : > { %2179 = dma.hbm_to_vmem [thread:$0]  (!%p2489_p11), %s2751_s2, 8192, %s2493_s25, [#allocation6], %s2412_s29, %s2412_s29, %s2413_s30  }
  0x3e   : > { %s2548_s6 = sadd.s32 1, %s2406_s15   ;;  %s27_s8 = sadd.s32 1, %s2402_s14 }
  0x3f   : > { %s24_s7 = ssub.s32 %s2406_s15, %s2548_s6  ;;  %p34_p6 = scmp.ne.s32.totalorder %s2402_s14, %s2398_s13 }
  0x40   : > { %p25_p13 = scmp.eq.s32.totalorder %s24_s7, 0  ;;  %p35_p10 = scmp.eq.s32.totalorder %s2406_s15, 0 }
  0x41   : > { %p2760_p5 = scmp.eq.s32.totalorder %s2459_s16, 1  ;;  %p2190_p9 = scmp.lt.s32.totalorder %s2406_s15, 2 }
  0x42   : > { %s2557_s9 = scalar_select %p25_p13, %s2402_s14, %s27_s8  }
  0x43   : > { %p36_p3 = por %p35_p10, %p34_p6  ;;  %p2561_p7 = por %p2760_p5, %p34_p6 }
  0x44   : > { %s158_s23 = sand.u32 1, %s2402_s14   ;;  %s1765_s25 = sshll.u32 %s2406_s15, 7 }
  0x45   : > { %s2761_s10 = scalar_select %p2561_p7, 1, 0 }
  0x46   : > { %s1764_s11 = sshll.u32 %s158_s23, 3  ;;  %s2571_s24 = scalar_lea.hbm %s2749_s0, %s1765_s25 }
  0x47   : > { %s162_s26 = scalar_lea.vmem [#allocation2], %s1764_s11  ;;  %p2575_p11 = pnand %p2190_p9, %p36_p3 }
  0x48   : > { %s169_s27 = sshll.u32 %s162_s26, 4  ;;  %s159_s22 = scalar_lea.sflag [#allocation3], %s158_s23  ;;  %s2573_s27 = int_to_ptr.vmem [resolvable:$true] %s169_s27 }
  0x49   : > { %s2306_s29 = scalar_lea.hbm %s2571_s24, 128  ;;  %p2308_p0 = pneg %p2575_p11 }
  0x4a   : > { %p2307_p12 = scmp.ne.s32.totalorder %s2571_s24, %s2306_s29  ;;  %s2311_s5 = scalar_lea.hbm %s2749_s0, 256 }
  0x4b   : > { %p2312_p13 = scmp.lt.u32.totalorder %s2571_s24, %s2749_s0  ;;  %p2313_p6 = scmp.lt.u32.totalorder %s2311_s5, %s2306_s29 }
  0x4c   : > { %p2309_p2 = pnand %p2308_p0, %p2307_p12  ;;  %p2315_p3 = scmp.lt.u32.totalorder %s2306_s29, %s2571_s24 }
  0x4d   : > { %p2314_p10 = por %p2313_p6, %p2312_p13 }
  0x4e   : > { %p2310_p1 = pneg %p2309_p2 }
  0x4f   : > { %p2316_p5 = por %p2315_p3, %p2314_p10 }
  0x51   : > { %p2317_p9 = pnand %p2316_p5, %p2310_p1 }
  0x53   : > { %2320 = shalt.err (!%p2317_p9)
}
  0x54   : > { %s2321_s23 = scalar_lea.vmem %s2573_s27, 128  ;;  %s2414_s11 = smov [#allocation2]  }
  0x55   : > { %p2322_p12 = scmp.ne.s32.totalorder %s2573_s27, %s2321_s23  ;;  %s2326_s25 = sshll.u32 %s2414_s11, 4  ;;  %s2327_s25 = int_to_ptr.vmem [resolvable:$false] %s2326_s25 }
  0x56   : > { %s2328_s17 = scalar_lea.vmem %s2327_s25, 256  ;;  %p2329_p4 = scmp.lt.s32.totalorder %s2573_s27, %s2327_s25 }
  0x57   : > { %p2324_p2 = pnand %p2322_p12, %p2308_p0  ;;  %p2330_p13 = scmp.lt.s32.totalorder %s2328_s17, %s2321_s23 }
  0x59   : > { %p2325_p7 = pneg %p2324_p2  ;;  %p2331_p6 = por %p2330_p13, %p2329_p4 }
  0x5b   : > { %p2332_p10 = pnand %p2331_p6, %p2325_p7 }
  0x5d   : > { %2335 = shalt.err (!%p2332_p10)
}
  0x5e   : > { %2183 = dma.hbm_to_vmem [thread:$0]  (!%p2575_p11), %s2571_s24, 128, %s2573_s27, %s159_s22  }
  0x5f   : > { %178 = sbr.rel (%p2478_p8) target bundleno = 1371 (0x55b), region = 32  ;;  %s2607_s21 = sand.u32 (!%p2478_p8), 1, %s2398_s13  }
  0x60   : > { %s1767_s26 = sshll.u32 (!%p2478_p8), %s2607_s21, 3  ;;  %s181_s29 = scalar_lea.sflag (!%p2478_p8), [#allocation3], %s2607_s21 }
  0x61   : > { %s2613_s30 = scalar_lea.vmem (!%p2478_p8), [#allocation2], %s1767_s26  ;;  %p2763_p4 = scmp.ne.s32.totalorder (!%p2478_p8), %s2756_s18, 0 }
  0x66   : > { %2381 = dma.done.wait (%p2763_p4), %s181_s29, 128  }
  0x67   : > { %2383 = vsyncadd (%p2763_p4), %s181_s29, 4294967168  ;;  %p2764_p7 = scmp.eq.s32.totalorder %s2459_s16, 0 }
  0x69   : > { %2385 = dma.done.wait (%p2764_p7), [#allocation6], 32768   ;;  %p2765_p8 = pmov %p2764_p7 }
  0x6a   : > { %v2415_v0 = vmov 0.0   ;;  %v217_v1 = vld [vmem:[#allocation5 + $0x8] sm:$0xff]  ;;  %v216_v3 = vld [vmem:[#allocation5] sm:$0xff]  ;;  %v219_v12 = vld [vmem:[#allocation5 + $0x18] sm:$0xff]  ;;  %vm2416_vm0 = vmmov 0   ;;  %vm968_vm1 = vcmask 64512  }
  0x6b   : > { %2387 = vsyncadd (%p2765_p8), [#allocation6], 4294934528  ;;  %536 = vmatprep.mubr.f32.mxu0 %v2415_v0  ;;  %607 = vmatprep.mubr.f32.mxu1 %v2415_v0  ;;  %v229_v2 = vld [vmem:[#allocation5 + $0x68] sm:$0xff]  ;;  %v228_v5 = vld [vmem:[#allocation5 + $0x60] sm:$0xff]  ;;  %s1776_s18 = sshll.u32 %s2459_s16, 7  ;;  %s214_s20 = scalar_lea.vmem [#allocation8], %s1767_s26 }
  0x6c   : > { %v1905_v4 = vpack.c.bf16 %v229_v2, %v217_v1  ;;  %v241_v6 = vld [vmem:[#allocation5 + $0xc8] sm:$0xff]  ;;  %v1907_v8 = vpack.c.bf16 %v228_v5, %v216_v3  ;;  %v240_v10 = vld [vmem:[#allocation5 + $0xc0] sm:$0xff]  ;;  %v231_v13 = vld [vmem:[#allocation5 + $0x78] sm:$0xff]  ;;  %s1670_s24 = sshll.u32 %s214_s20, 4  ;;  %s2705_s22 = scalar_lea.hbm %s2752_s3, %s1776_s18  ;;  %s2707_s24 = int_to_ptr.vmem [resolvable:$true] %s1670_s24 }
  0x6d   : > { %v253_v7 = vld [vmem:[#allocation5 + $0x128] sm:$0xff]  ;;  %v252_v11 = vld [vmem:[#allocation5 + $0x120] sm:$0xff]  ;;  %v1937_v17 = vpack.c.bf16 %v231_v13, %v219_v12  ;;  %v218_v18 = vld [vmem:[#allocation5 + $0x10] sm:$0xff]  ;;  %s1657_s4 = scalar_lea.sflag [#allocation4], %s2607_s21  ;;  %s2336_s5 = scalar_lea.vmem %s2707_s24, 128 }
  0x6e   : > { %v1909_v9 = vpack.c.bf16 %v253_v7, %v241_v6  ;;  %1906 = vmatprep.subr.bf16.mxu0 %v1905_v4  ;;  %v265_v14 = vld [vmem:[#allocation5 + $0x188] sm:$0xff]  ;;  %v1911_v16 = vpack.c.bf16 %v252_v11, %v240_v10  ;;  %v230_v19 = vld [vmem:[#allocation5 + $0x70] sm:$0xff]  ;;  %v264_v20 = vld [vmem:[#allocation5 + $0x180] sm:$0xff]  ;;  %p2337_p11 = scmp.ne.s32.totalorder %s2707_s24, %s2336_s5  ;;  %p2766_p0 = scmp.ne.s32.totalorder %s2761_s10, 0 }
  0x6f   : > { %v277_v15 = vld [vmem:[#allocation5 + $0x1e8] sm:$0xff]  ;;  %1908 = vmatpush1.bf16.msra.mxu0 %v1907_v8  ;;  %v1939_v22 = vpack.c.bf16 %v230_v19, %v218_v18  ;;  %v276_v23 = vld [vmem:[#allocation5 + $0x1e0] sm:$0xff]  ;;  %v243_v24 = vld [vmem:[#allocation5 + $0xd8] sm:$0xff]  ;;  %1938 = vmatprep.subr.bf16.mxu1 %v1937_v17  ;;  %s2417_s16 = smov [#allocation8]  }
  0x70   : > { %1910 = vmatprep.subr.bf16.mxu0 %v1909_v9  ;;  %v1913_v21 = vpack.c.bf16 %v277_v15, %v265_v14  ;;  %v255_v25 = vld [vmem:[#allocation5 + $0x138] sm:$0xff]  ;;  %v289_v27 = vld [vmem:[#allocation5 + $0x248] sm:$0xff]  ;;  %v242_v29 = vld [vmem:[#allocation5 + $0xd0] sm:$0xff]  ;;  %v1915_v31 = vpack.c.bf16 %v276_v23, %v264_v20  ;;  %p2338_p1 = pnand %p2337_p11, %p2766_p0  ;;  %s2340_s7 = sshll.u32 %s2417_s16, 4  ;;  %s2341_s7 = int_to_ptr.vmem [resolvable:$false] %s2340_s7 }
  0x71   : > { %v1941_v26 = vpack.c.bf16 %v255_v25, %v243_v24  ;;  %v301_v28 = vld [vmem:[#allocation5 + $0x2a8] sm:$0xff]  ;;  %1940 = vmatpush1.bf16.msra.mxu1 %v1939_v22  ;;  %v254_v30 = vld [vmem:[#allocation5 + $0x130] sm:$0xff]  ;;  %v288_v33 = vld [vmem:[#allocation5 + $0x240] sm:$0xff]  ;;  %s2342_s8 = scalar_lea.vmem %s2341_s7, 256  ;;  %p2343_p5 = scmp.lt.s32.totalorder %s2707_s24, %s2341_s7 }
  0x72   : > { %v1943_v32 = vpack.c.bf16 %v254_v30, %v242_v29  ;;  %v267_v34 = vld [vmem:[#allocation5 + $0x198] sm:$0xff]  ;;  %v1917_v36 = vpack.c.bf16 %v301_v28, %v289_v27  ;;  %v300_v37 = vld [vmem:[#allocation5 + $0x2a0] sm:$0xff]  ;;  %v266_v39 = vld [vmem:[#allocation5 + $0x190] sm:$0xff]  ;;  %p2339_p3 = pneg %p2338_p1  ;;  %p2344_p9 = scmp.lt.s32.totalorder %s2342_s8, %s2336_s5 }
  0x73   : > { %1912 = vmatpush1.bf16.msra.mxu0 %v1911_v16  ;;  %1942 = vmatprep.subr.bf16.mxu1 %v1941_v26  ;;  %v279_v35 = vld [vmem:[#allocation5 + $0x1f8] sm:$0xff]  ;;  %v278_v40 = vld [vmem:[#allocation5 + $0x1f0] sm:$0xff]  ;;  %v313_v41 = vld [vmem:[#allocation5 + $0x308] sm:$0xff]  ;;  %v1919_v46 = vpack.c.bf16 %v300_v37, %v288_v33 }
  0x74   : > { %1914 = vmatprep.subr.bf16.mxu0 %v1913_v21  ;;  %v1945_v38 = vpack.c.bf16 %v279_v35, %v267_v34  ;;  %v325_v42 = vld [vmem:[#allocation5 + $0x368] sm:$0xff]  ;;  %v291_v43 = vld [vmem:[#allocation5 + $0x258] sm:$0xff]  ;;  %v1947_v44 = vpack.c.bf16 %v278_v40, %v266_v39  ;;  %v312_v47 = vld [vmem:[#allocation5 + $0x300] sm:$0xff]  ;;  %p2345_p12 = por %p2344_p9, %p2343_p5 }
  0x75   : > { %1944 = vmatpush1.bf16.msra.mxu1 %v1943_v32  ;;  %v303_v45 = vld [vmem:[#allocation5 + $0x2b8] sm:$0xff]  ;;  %v290_v49 = vld [vmem:[#allocation5 + $0x250] sm:$0xff]  ;;  %v1921_v51 = vpack.c.bf16 %v325_v42, %v313_v41  ;;  %v324_v52 = vld [vmem:[#allocation5 + $0x360] sm:$0xff] }
  0x76   : > { %1946 = vmatprep.subr.bf16.mxu1 %v1945_v38  ;;  %v1949_v48 = vpack.c.bf16 %v303_v45, %v291_v43  ;;  %v302_v50 = vld [vmem:[#allocation5 + $0x2b0] sm:$0xff]  ;;  %v315_v53 = vld [vmem:[#allocation5 + $0x318] sm:$0xff]  ;;  %v337_v55 = vld [vmem:[#allocation5 + $0x3c8] sm:$0xff]  ;;  %v1923_v58 = vpack.c.bf16 %v324_v52, %v312_v47  ;;  %p2346_p2 = pnand %p2345_p12, %p2339_p3 }
  0x77   : > { %1916 = vmatpush1.bf16.msra.mxu0 %v1915_v31  ;;  %v327_v54 = vld [vmem:[#allocation5 + $0x378] sm:$0xff]  ;;  %v349_v56 = vld [vmem:[#allocation5 + $0x428] sm:$0xff]  ;;  %v1951_v57 = vpack.c.bf16 %v302_v50, %v290_v49  ;;  %v336_v59 = vld [vmem:[#allocation5 + $0x3c0] sm:$0xff] }
  0x78   : > { %1918 = vmatprep.subr.bf16.mxu0 %v1917_v36  ;;  %v1953_v60 = vpack.c.bf16 %v327_v54, %v315_v53  ;;  %v314_v61 = vld [vmem:[#allocation5 + $0x310] sm:$0xff]  ;;  %v1925_v63 = vpack.c.bf16 %v349_v56, %v337_v55  ;;  %v348_v1 = vld [vmem:[#allocation5 + $0x420] sm:$0xff]  ;;  %v339_v2 = vld [vmem:[#allocation5 + $0x3d8] sm:$0xff] }
  0x79   : > { %1948 = vmatpush1.bf16.msra.mxu1 %v1947_v44  ;;  %v326_v62 = vld [vmem:[#allocation5 + $0x370] sm:$0xff]  ;;  %v351_v3 = vld [vmem:[#allocation5 + $0x438] sm:$0xff]  ;;  %v361_v4 = vld [vmem:[#allocation5 + $0x488] sm:$0xff]  ;;  %v1927_v7 = vpack.c.bf16 %v348_v1, %v336_v59 }
  0x7a   : > { %1950 = vmatprep.subr.bf16.mxu1 %v1949_v48  ;;  %v373_v5 = vld [vmem:[#allocation5 + $0x4e8] sm:$0xff]  ;;  %v1955_v6 = vpack.c.bf16 %v326_v62, %v314_v61  ;;  %v360_v8 = vld [vmem:[#allocation5 + $0x480] sm:$0xff]  ;;  %v1957_v9 = vpack.c.bf16 %v351_v3, %v339_v2  ;;  %v338_v10 = vld [vmem:[#allocation5 + $0x3d0] sm:$0xff] }
  0x7b   : > { %1920 = vmatpush1.bf16.msra.mxu0 %v1919_v46  ;;  %v350_v11 = vld [vmem:[#allocation5 + $0x430] sm:$0xff]  ;;  %v1929_v12 = vpack.c.bf16 %v373_v5, %v361_v4  ;;  %v372_v13 = vld [vmem:[#allocation5 + $0x4e0] sm:$0xff]  ;;  %v363_v14 = vld [vmem:[#allocation5 + $0x498] sm:$0xff] }
  0x7c   : > { %1922 = vmatprep.subr.bf16.mxu0 %v1921_v51  ;;  %v375_v15 = vld [vmem:[#allocation5 + $0x4f8] sm:$0xff]  ;;  %v385_v16 = vld [vmem:[#allocation5 + $0x548] sm:$0xff]  ;;  %v1959_v18 = vpack.c.bf16 %v350_v11, %v338_v10  ;;  %v1931_v19 = vpack.c.bf16 %v372_v13, %v360_v8  ;;  %v384_v20 = vld [vmem:[#allocation5 + $0x540] sm:$0xff] }
  0x7d   : > { %1952 = vmatpush1.bf16.msra.mxu1 %v1951_v57  ;;  %v397_v17 = vld [vmem:[#allocation5 + $0x5a8] sm:$0xff]  ;;  %v1961_v21 = vpack.c.bf16 %v375_v15, %v363_v14  ;;  %v362_v22 = vld [vmem:[#allocation5 + $0x490] sm:$0xff]  ;;  %v396_v25 = vld [vmem:[#allocation5 + $0x5a0] sm:$0xff] }
  0x7e   : > { %1954 = vmatprep.subr.bf16.mxu1 %v1953_v60  ;;  %v374_v23 = vld [vmem:[#allocation5 + $0x4f0] sm:$0xff]  ;;  %v1933_v24 = vpack.c.bf16 %v397_v17, %v385_v16  ;;  %v387_v26 = vld [vmem:[#allocation5 + $0x558] sm:$0xff]  ;;  %v221_v28 = vld [vmem:[#allocation5 + $0x28] sm:$0xff]  ;;  %v1935_v31 = vpack.c.bf16 %v396_v25, %v384_v20 }
  0x7f   : > { %1924 = vmatpush1.bf16.msra.mxu0 %v1923_v58  ;;  %v399_v27 = vld [vmem:[#allocation5 + $0x5b8] sm:$0xff]  ;;  %v233_v29 = vld [vmem:[#allocation5 + $0x88] sm:$0xff]  ;;  %v1963_v30 = vpack.c.bf16 %v374_v23, %v362_v22  ;;  %v220_v32 = vld [vmem:[#allocation5 + $0x20] sm:$0xff] }
  0x80   : > { %1926 = vmatprep.subr.bf16.mxu0 %v1925_v63  ;;  %v1965_v33 = vpack.c.bf16 %v399_v27, %v387_v26  ;;  %v386_v34 = vld [vmem:[#allocation5 + $0x550] sm:$0xff]  ;;  %v1969_v36 = vpack.c.bf16 %v233_v29, %v221_v28  ;;  %v232_v37 = vld [vmem:[#allocation5 + $0x80] sm:$0xff]  ;;  %v223_v38 = vld [vmem:[#allocation5 + $0x38] sm:$0xff] }
  0x81   : > { %1956 = vmatpush1.bf16.msra.mxu1 %v1955_v6  ;;  %v398_v35 = vld [vmem:[#allocation5 + $0x5b0] sm:$0xff]  ;;  %v235_v39 = vld [vmem:[#allocation5 + $0x98] sm:$0xff]  ;;  %v245_v40 = vld [vmem:[#allocation5 + $0xe8] sm:$0xff]  ;;  %v1971_v44 = vpack.c.bf16 %v232_v37, %v220_v32 }
  0x82   : > { %1958 = vmatprep.subr.bf16.mxu1 %v1957_v9  ;;  %v257_v41 = vld [vmem:[#allocation5 + $0x148] sm:$0xff]  ;;  %v2626_v42 = vld [vmem:[%s2613_s30] sm:$0xff]  ;;  %v1967_v43 = vpack.c.bf16 %v398_v35, %v386_v34  ;;  %v244_v45 = vld [vmem:[#allocation5 + $0xe0] sm:$0xff]  ;;  %v2001_v46 = vpack.c.bf16 %v235_v39, %v223_v38 }
  0x83   : > { %1928 = vmatpush1.bf16.msra.mxu0 %v1927_v7  ;;  %v222_v47 = vld [vmem:[#allocation5 + $0x30] sm:$0xff]  ;;  %v1973_v49 = vpack.c.bf16 %v257_v41, %v245_v40  ;;  %v256_v50 = vld [vmem:[#allocation5 + $0x140] sm:$0xff]  ;;  %v247_v51 = vld [vmem:[#allocation5 + $0xf8] sm:$0xff] }
  0x84   : > { %1930 = vmatprep.subr.bf16.mxu0 %v1929_v12  ;;  %v234_v48 = vld [vmem:[#allocation5 + $0x90] sm:$0xff]  ;;  %v259_v52 = vld [vmem:[#allocation5 + $0x158] sm:$0xff]  ;;  %v269_v53 = vld [vmem:[#allocation5 + $0x1a8] sm:$0xff]  ;;  %v1975_v56 = vpack.c.bf16 %v256_v50, %v244_v45 }
  0x85   : > { %1960 = vmatpush1.bf16.msra.mxu1 %v1959_v18  ;;  %v281_v54 = vld [vmem:[#allocation5 + $0x208] sm:$0xff]  ;;  %v2003_v55 = vpack.c.bf16 %v234_v48, %v222_v47  ;;  %v268_v57 = vld [vmem:[#allocation5 + $0x1a0] sm:$0xff]  ;;  %v2005_v58 = vpack.c.bf16 %v259_v52, %v247_v51  ;;  %v246_v59 = vld [vmem:[#allocation5 + $0xf0] sm:$0xff] }
  0x86   : > { %1962 = vmatprep.subr.bf16.mxu1 %v1961_v21  ;;  %v258_v60 = vld [vmem:[#allocation5 + $0x150] sm:$0xff]  ;;  %v1977_v61 = vpack.c.bf16 %v281_v54, %v269_v53  ;;  %v280_v62 = vld [vmem:[#allocation5 + $0x200] sm:$0xff]  ;;  %v271_v63 = vld [vmem:[#allocation5 + $0x1b8] sm:$0xff] }
  0x87   : > { %1932 = vmatpush1.bf16.msra.mxu0 %v1931_v19  ;;  %v283_v1 = vld [vmem:[#allocation5 + $0x218] sm:$0xff]  ;;  %v293_v2 = vld [vmem:[#allocation5 + $0x268] sm:$0xff]  ;;  %v2007_v4 = vpack.c.bf16 %v258_v60, %v246_v59  ;;  %v1979_v5 = vpack.c.bf16 %v280_v62, %v268_v57  ;;  %v292_v6 = vld [vmem:[#allocation5 + $0x260] sm:$0xff] }
  0x88   : > { %1934 = vmatprep.subr.bf16.mxu0 %v1933_v24  ;;  %v305_v3 = vld [vmem:[#allocation5 + $0x2c8] sm:$0xff]  ;;  %v2009_v7 = vpack.c.bf16 %v283_v1, %v271_v63  ;;  %v270_v8 = vld [vmem:[#allocation5 + $0x1b0] sm:$0xff]  ;;  %v304_v11 = vld [vmem:[#allocation5 + $0x2c0] sm:$0xff] }
  0x89   : > { %1964 = vmatpush1.bf16.msra.mxu1 %v1963_v30  ;;  %v282_v9 = vld [vmem:[#allocation5 + $0x210] sm:$0xff]  ;;  %v1981_v10 = vpack.c.bf16 %v305_v3, %v293_v2  ;;  %v295_v12 = vld [vmem:[#allocation5 + $0x278] sm:$0xff]  ;;  %v317_v14 = vld [vmem:[#allocation5 + $0x328] sm:$0xff]  ;;  %v1983_v17 = vpack.c.bf16 %v304_v11, %v292_v6 }
  0x8a   : > { %1966 = vmatprep.subr.bf16.mxu1 %v1965_v33  ;;  %v307_v13 = vld [vmem:[#allocation5 + $0x2d8] sm:$0xff]  ;;  %v329_v15 = vld [vmem:[#allocation5 + $0x388] sm:$0xff]  ;;  %v2011_v16 = vpack.c.bf16 %v282_v9, %v270_v8  ;;  %v316_v18 = vld [vmem:[#allocation5 + $0x320] sm:$0xff] }
  0x8b   : > { %1936 = vmatpush1.bf16.msra.mxu0 %v1935_v31  ;;  %v2013_v19 = vpack.c.bf16 %v307_v13, %v295_v12  ;;  %v294_v20 = vld [vmem:[#allocation5 + $0x270] sm:$0xff]  ;;  %v1985_v22 = vpack.c.bf16 %v329_v15, %v317_v14  ;;  %v328_v23 = vld [vmem:[#allocation5 + $0x380] sm:$0xff]  ;;  %v319_v24 = vld [vmem:[#allocation5 + $0x338] sm:$0xff] }
  0x8c   : > { %1970 = vmatprep.subr.bf16.mxu0 %v1969_v36  ;;  %v306_v21 = vld [vmem:[#allocation5 + $0x2d0] sm:$0xff]  ;;  %v331_v25 = vld [vmem:[#allocation5 + $0x398] sm:$0xff]  ;;  %v341_v26 = vld [vmem:[#allocation5 + $0x3e8] sm:$0xff]  ;;  %v1987_v29 = vpack.c.bf16 %v328_v23, %v316_v18 }
  0x8d   : > { %1968 = vmatpush1.bf16.msra.mxu1 %v1967_v43  ;;  %v353_v27 = vld [vmem:[#allocation5 + $0x448] sm:$0xff]  ;;  %v2015_v28 = vpack.c.bf16 %v306_v21, %v294_v20  ;;  %v340_v30 = vld [vmem:[#allocation5 + $0x3e0] sm:$0xff]  ;;  %v2017_v31 = vpack.c.bf16 %v331_v25, %v319_v24  ;;  %v318_v32 = vld [vmem:[#allocation5 + $0x330] sm:$0xff] }
  0x8e   : > { %537 = vmatmul.mubr.f32.vlgmr.msra.gmra.mrb[0].mxu0 %v2626_v42  ;;  %2002 = vmatprep.subr.bf16.mxu1 %v2001_v46  ;;  %v330_v33 = vld [vmem:[#allocation5 + $0x390] sm:$0xff]  ;;  %v1989_v34 = vpack.c.bf16 %v353_v27, %v341_v26  ;;  %v352_v35 = vld [vmem:[#allocation5 + $0x440] sm:$0xff]  ;;  %v343_v36 = vld [vmem:[#allocation5 + $0x3f8] sm:$0xff] }
  0x8f   : > { %1972 = vmatpush1.bf16.msra.mxu0 %v1971_v44  ;;  %678 = vmatprep.mubr.f32.mxu0 %v2415_v0  ;;  %v355_v37 = vld [vmem:[#allocation5 + $0x458] sm:$0xff]  ;;  %v365_v38 = vld [vmem:[#allocation5 + $0x4a8] sm:$0xff]  ;;  %v2019_v40 = vpack.c.bf16 %v330_v33, %v318_v32  ;;  %v1991_v41 = vpack.c.bf16 %v352_v35, %v340_v30  ;;  %v364_v43 = vld [vmem:[#allocation5 + $0x4a0] sm:$0xff] }
  0x90   : > { %1974 = vmatprep.subr.bf16.mxu0 %v1973_v49  ;;  %608 = vmatmul.mubr.f32.vlgmr.msra.gmra.mrb[0].mxu1 %v2626_v42  ;;  %v377_v39 = vld [vmem:[#allocation5 + $0x508] sm:$0xff]  ;;  %v2021_v44 = vpack.c.bf16 %v355_v37, %v343_v36  ;;  %v342_v45 = vld [vmem:[#allocation5 + $0x3f0] sm:$0xff]  ;;  %v376_v48 = vld [vmem:[#allocation5 + $0x500] sm:$0xff] }
  0x91   : > { %2004 = vmatpush1.bf16.msra.mxu1 %v2003_v55  ;;  %749 = vmatprep.mubr.f32.mxu1 %v2415_v0  ;;  %v354_v46 = vld [vmem:[#allocation5 + $0x450] sm:$0xff]  ;;  %v1993_v47 = vpack.c.bf16 %v377_v39, %v365_v38  ;;  %v367_v49 = vld [vmem:[#allocation5 + $0x4b8] sm:$0xff]  ;;  %v389_v51 = vld [vmem:[#allocation5 + $0x568] sm:$0xff]  ;;  %v1995_v54 = vpack.c.bf16 %v376_v48, %v364_v43 }
  0x92   : > { %2006 = vmatprep.subr.bf16.mxu1 %v2005_v58  ;;  %v379_v50 = vld [vmem:[#allocation5 + $0x518] sm:$0xff]  ;;  %v401_v52 = vld [vmem:[#allocation5 + $0x5c8] sm:$0xff]  ;;  %v2023_v53 = vpack.c.bf16 %v354_v46, %v342_v45  ;;  %v388_v55 = vld [vmem:[#allocation5 + $0x560] sm:$0xff] }
  0x93   : > { %1976 = vmatpush1.bf16.msra.mxu0 %v1975_v56  ;;  %v2025_v56 = vpack.c.bf16 %v379_v50, %v367_v49  ;;  %v366_v57 = vld [vmem:[#allocation5 + $0x4b0] sm:$0xff]  ;;  %v1997_v59 = vpack.c.bf16 %v401_v52, %v389_v51  ;;  %v400_v60 = vld [vmem:[#allocation5 + $0x5c0] sm:$0xff]  ;;  %v403_v62 = vld [vmem:[#allocation5 + $0x5d8] sm:$0xff] }
  0x94   : > { %1978 = vmatprep.subr.bf16.mxu0 %v1977_v61  ;;  %v378_v58 = vld [vmem:[#allocation5 + $0x510] sm:$0xff]  ;;  %v391_v61 = vld [vmem:[#allocation5 + $0x578] sm:$0xff]  ;;  %v225_v63 = vld [vmem:[#allocation5 + $0x48] sm:$0xff]  ;;  %v1999_v3 = vpack.c.bf16 %v400_v60, %v388_v55 }
  0x95   : > { %2008 = vmatpush1.bf16.msra.mxu1 %v2007_v4  ;;  %v237_v1 = vld [vmem:[#allocation5 + $0xa8] sm:$0xff]  ;;  %v2027_v2 = vpack.c.bf16 %v378_v58, %v366_v57  ;;  %v2029_v4 = vpack.c.bf16 %v403_v62, %v391_v61  ;;  %v402_v6 = vld [vmem:[#allocation5 + $0x5d0] sm:$0xff]  ;;  %v224_v8 = vld [vmem:[#allocation5 + $0x40] sm:$0xff] }
  0x96   : > { %2010 = vmatprep.subr.bf16.mxu1 %v2009_v7  ;;  %v2033_v7 = vpack.c.bf16 %v237_v1, %v225_v63  ;;  %v236_v9 = vld [vmem:[#allocation5 + $0xa0] sm:$0xff]  ;;  %v261_v11 = vld [vmem:[#allocation5 + $0x168] sm:$0xff]  ;;  %v227_v55 = vld [vmem:[#allocation5 + $0x58] sm:$0xff] }
  0x97   : > { %1980 = vmatpush1.bf16.msra.mxu0 %v1979_v5  ;;  %v390_v5 = vld [vmem:[#allocation5 + $0x570] sm:$0xff]  ;;  %v2035_v13 = vpack.c.bf16 %v236_v9, %v224_v8  ;;  %v248_v15 = vld [vmem:[#allocation5 + $0x100] sm:$0xff]  ;;  %v273_v18 = vld [vmem:[#allocation5 + $0x1c8] sm:$0xff] }
  0x98   : > { %1982 = vmatprep.subr.bf16.mxu0 %v1981_v10  ;;  %v249_v10 = vld [vmem:[#allocation5 + $0x108] sm:$0xff]  ;;  %v2031_v12 = vpack.c.bf16 %v402_v6, %v390_v5  ;;  %v272_v21 = vld [vmem:[#allocation5 + $0x1c0] sm:$0xff]  ;;  %v226_v57 = vld [vmem:[#allocation5 + $0x50] sm:$0xff] }
  0x99   : > { %2012 = vmatpush1.bf16.msra.mxu1 %v2011_v16  ;;  %v2037_v14 = vpack.c.bf16 %v261_v11, %v249_v10  ;;  %v260_v16 = vld [vmem:[#allocation5 + $0x160] sm:$0xff]  ;;  %v297_v23 = vld [vmem:[#allocation5 + $0x288] sm:$0xff]  ;;  %v251_v60 = vld [vmem:[#allocation5 + $0x118] sm:$0xff] }
  0x9a   : > { %2014 = vmatprep.subr.bf16.mxu1 %v2013_v19  ;;  %v285_v19 = vld [vmem:[#allocation5 + $0x228] sm:$0xff]  ;;  %v296_v27 = vld [vmem:[#allocation5 + $0x280] sm:$0xff]  ;;  %v263_v61 = vld [vmem:[#allocation5 + $0x178] sm:$0xff] }
  0x9b   : > { %1984 = vmatpush1.bf16.msra.mxu0 %v1983_v17  ;;  %v2039_v17 = vpack.c.bf16 %v260_v16, %v248_v15  ;;  %v2041_v20 = vpack.c.bf16 %v285_v19, %v273_v18  ;;  %v309_v25 = vld [vmem:[#allocation5 + $0x2e8] sm:$0xff]  ;;  %v320_v33 = vld [vmem:[#allocation5 + $0x340] sm:$0xff]  ;;  %v2069_v63 = vpack.c.bf16 %v263_v61, %v251_v60  ;;  %v250_v1 = vld [vmem:[#allocation5 + $0x110] sm:$0xff] }
  0x9c   : > { %1986 = vmatprep.subr.bf16.mxu0 %v1985_v22  ;;  %v284_v22 = vld [vmem:[#allocation5 + $0x220] sm:$0xff]  ;;  %v2045_v26 = vpack.c.bf16 %v309_v25, %v297_v23  ;;  %v321_v30 = vld [vmem:[#allocation5 + $0x348] sm:$0xff]  ;;  %v286_v8 = vld [vmem:[#allocation5 + $0x230] sm:$0xff] }
  0x9d   : > { %2016 = vmatpush1.bf16.msra.mxu1 %v2015_v28  ;;  %v2043_v24 = vpack.c.bf16 %v284_v22, %v272_v21  ;;  %v308_v28 = vld [vmem:[#allocation5 + $0x2e0] sm:$0xff]  ;;  %v345_v35 = vld [vmem:[#allocation5 + $0x408] sm:$0xff]  ;;  %v299_v9 = vld [vmem:[#allocation5 + $0x298] sm:$0xff] }
  0x9e   : > { %2018 = vmatprep.subr.bf16.mxu1 %v2017_v31  ;;  %v333_v31 = vld [vmem:[#allocation5 + $0x3a8] sm:$0xff]  ;;  %v344_v39 = vld [vmem:[#allocation5 + $0x400] sm:$0xff]  ;;  %v311_v10 = vld [vmem:[#allocation5 + $0x2f8] sm:$0xff] }
  0x9f   : > { %1988 = vmatpush1.bf16.msra.mxu0 %v1987_v29  ;;  %v2047_v29 = vpack.c.bf16 %v308_v28, %v296_v27  ;;  %v2049_v32 = vpack.c.bf16 %v333_v31, %v321_v30  ;;  %v357_v36 = vld [vmem:[#allocation5 + $0x468] sm:$0xff]  ;;  %v368_v46 = vld [vmem:[#allocation5 + $0x4c0] sm:$0xff]  ;;  %v323_v15 = vld [vmem:[#allocation5 + $0x358] sm:$0xff] }
  0xa0   : > { %1990 = vmatprep.subr.bf16.mxu0 %v1989_v34  ;;  %v332_v34 = vld [vmem:[#allocation5 + $0x3a0] sm:$0xff]  ;;  %v2053_v38 = vpack.c.bf16 %v357_v36, %v345_v35  ;;  %v381_v43 = vld [vmem:[#allocation5 + $0x528] sm:$0xff]  ;;  %v335_v16 = vld [vmem:[#allocation5 + $0x3b8] sm:$0xff] }
  0xa1   : > { %2020 = vmatpush1.bf16.msra.mxu1 %v2019_v40  ;;  %v2051_v37 = vpack.c.bf16 %v332_v34, %v320_v33  ;;  %v356_v40 = vld [vmem:[#allocation5 + $0x460] sm:$0xff]  ;;  %v393_v48 = vld [vmem:[#allocation5 + $0x588] sm:$0xff]  ;;  %v2081_v18 = vpack.c.bf16 %v335_v16, %v323_v15  ;;  %v322_v19 = vld [vmem:[#allocation5 + $0x350] sm:$0xff] }
  0xa2   : > { %2022 = vmatprep.subr.bf16.mxu1 %v2021_v44  ;;  %v2055_v44 = vpack.c.bf16 %v356_v40, %v344_v39  ;;  %v405_v49 = vld [vmem:[#allocation5 + $0x5e8] sm:$0xff]  ;;  %v392_v52 = vld [vmem:[#allocation5 + $0x580] sm:$0xff]  ;;  %v347_v21 = vld [vmem:[#allocation5 + $0x418] sm:$0xff] }
  0xa3   : > { %1992 = vmatpush1.bf16.msra.mxu0 %v1991_v41  ;;  %v369_v41 = vld [vmem:[#allocation5 + $0x4c8] sm:$0xff]  ;;  %v2061_v51 = vpack.c.bf16 %v405_v49, %v393_v48  ;;  %v359_v22 = vld [vmem:[#allocation5 + $0x478] sm:$0xff]  ;;  %v346_v25 = vld [vmem:[#allocation5 + $0x410] sm:$0xff] }
  0xa4   : > { %1994 = vmatprep.subr.bf16.mxu0 %v1993_v47  ;;  %v2057_v45 = vpack.c.bf16 %v381_v43, %v369_v41  ;;  %v380_v47 = vld [vmem:[#allocation5 + $0x520] sm:$0xff]  ;;  %v371_v27 = vld [vmem:[#allocation5 + $0x4d8] sm:$0xff]  ;;  %v370_v31 = vld [vmem:[#allocation5 + $0x4d0] sm:$0xff] }
  0xa5   : > { %2024 = vmatpush1.bf16.msra.mxu1 %v2023_v53  ;;  %v2059_v50 = vpack.c.bf16 %v380_v47, %v368_v46  ;;  %v404_v53 = vld [vmem:[#allocation5 + $0x5e0] sm:$0xff]  ;;  %v383_v28 = vld [vmem:[#allocation5 + $0x538] sm:$0xff] }
  0xa6   : > { %2026 = vmatprep.subr.bf16.mxu1 %v2025_v56  ;;  %v239_v56 = vld [vmem:[#allocation5 + $0xb8] sm:$0xff]  ;;  %v2089_v30 = vpack.c.bf16 %v383_v28, %v371_v27 }
  0xa7   : > { %1996 = vmatpush1.bf16.msra.mxu0 %v1995_v54  ;;  %v2063_v54 = vpack.c.bf16 %v404_v53, %v392_v52  ;;  %v2065_v58 = vpack.c.bf16 %v239_v56, %v227_v55  ;;  %v395_v33 = vld [vmem:[#allocation5 + $0x598] sm:$0xff] }
  0xa8   : > { %1998 = vmatprep.subr.bf16.mxu0 %v1997_v59  ;;  %v238_v59 = vld [vmem:[#allocation5 + $0xb0] sm:$0xff]  ;;  %v407_v34 = vld [vmem:[#allocation5 + $0x5f8] sm:$0xff] }
  0xa9   : > { %2028 = vmatpush1.bf16.msra.mxu1 %v2027_v2  ;;  %v2067_v62 = vpack.c.bf16 %v238_v59, %v226_v57  ;;  %v262_v2 = vld [vmem:[#allocation5 + $0x170] sm:$0xff]  ;;  %v2093_v36 = vpack.c.bf16 %v407_v34, %v395_v33  ;;  %v427_v27 = vld [vmem:[#allocation7 + $0x98] sm:$0xff]  ;;  %v429_v33 = vld [vmem:[#allocation7 + $0xa8] sm:$0xff] }
  0xaa   : > { %2030 = vmatprep.subr.bf16.mxu1 %v2029_v4  ;;  %v287_v4 = vld [vmem:[#allocation5 + $0x238] sm:$0xff]  ;;  %v2071_v5 = vpack.c.bf16 %v262_v2, %v250_v1 }
  0xab   : > { %2000 = vmatpush1.bf16.msra.mxu0 %v1999_v3  ;;  %v275_v3 = vld [vmem:[#allocation5 + $0x1d8] sm:$0xff] }
  0xac   : > { %2034 = vmatprep.subr.bf16.mxu0 %v2033_v7  ;;  %v2073_v6 = vpack.c.bf16 %v287_v4, %v275_v3  ;;  %v274_v7 = vld [vmem:[#allocation5 + $0x1d0] sm:$0xff] }
  0xad   : > { %2032 = vmatpush1.bf16.msra.mxu1 %v2031_v12  ;;  %v2075_v11 = vpack.c.bf16 %v286_v8, %v274_v7  ;;  %v2077_v12 = vpack.c.bf16 %v311_v10, %v299_v9 }
  0xae   : > { %679 = vmatmul.mubr.f32.vlgmr.msra.gmra.mrb[2].mxu0 %v2626_v42  ;;  %2066 = vmatprep.subr.bf16.mxu1 %v2065_v58 }
  0xaf   : > { %2036 = vmatpush1.bf16.msra.mxu0 %v2035_v13  ;;  %820 = vmatprep.mubr.f32.mxu0 %v2415_v0  ;;  %v298_v13 = vld [vmem:[#allocation5 + $0x290] sm:$0xff] }
  0xb0   : > { %2038 = vmatprep.subr.bf16.mxu0 %v2037_v14  ;;  %750 = vmatmul.mubr.f32.vlgmr.msra.gmra.mrb[2].mxu1 %v2626_v42  ;;  %v310_v14 = vld [vmem:[#allocation5 + $0x2f0] sm:$0xff] }
  0xb1   : > { %891 = vmatprep.mubr.f32.mxu1 %v2415_v0  ;;  %2068 = vmatpush1.bf16.msra.mxu1 %v2067_v62 }
  0xb2   : > { %2070 = vmatprep.subr.bf16.mxu1 %v2069_v63 }
  0xb3   : > { %2040 = vmatpush1.bf16.msra.mxu0 %v2039_v17  ;;  %v2079_v17 = vpack.c.bf16 %v310_v14, %v298_v13 }
  0xb4   : > { %2042 = vmatprep.subr.bf16.mxu0 %v2041_v20  ;;  %v334_v20 = vld [vmem:[#allocation5 + $0x3b0] sm:$0xff] }
  0xb5   : > { %2072 = vmatpush1.bf16.msra.mxu1 %v2071_v5  ;;  %v2083_v23 = vpack.c.bf16 %v334_v20, %v322_v19 }
  0xb6   : > { %2074 = vmatprep.subr.bf16.mxu1 %v2073_v6 }
  0xb7   : > { %2044 = vmatpush1.bf16.msra.mxu0 %v2043_v24  ;;  %v2085_v24 = vpack.c.bf16 %v359_v22, %v347_v21  ;;  %v424_v21 = vld [vmem:[#allocation7 + $0x80] sm:$0xff]  ;;  %v425_v22 = vld [vmem:[#allocation7 + $0x88] sm:$0xff] }
  0xb8   : > { %2046 = vmatprep.subr.bf16.mxu0 %v2045_v26  ;;  %v358_v26 = vld [vmem:[#allocation5 + $0x470] sm:$0xff] }
  0xb9   : > { %2076 = vmatpush1.bf16.msra.mxu1 %v2075_v11 }
  0xba   : > { %2078 = vmatprep.subr.bf16.mxu1 %v2077_v12 }
  0xbb   : > { %2048 = vmatpush1.bf16.msra.mxu0 %v2047_v29  ;;  %v2087_v29 = vpack.c.bf16 %v358_v26, %v346_v25  ;;  %v409_v25 = vld [vmem:[#allocation7 + $0x8] sm:$0xff]  ;;  %v426_v26 = vld [vmem:[#allocation7 + $0x90] sm:$0xff] }
  0xbc   : > { %2050 = vmatprep.subr.bf16.mxu0 %v2049_v32  ;;  %v382_v32 = vld [vmem:[#allocation5 + $0x530] sm:$0xff] }
  0xbd   : > { %2080 = vmatpush1.bf16.msra.mxu1 %v2079_v17  ;;  %v2091_v35 = vpack.c.bf16 %v382_v32, %v370_v31  ;;  %v411_v31 = vld [vmem:[#allocation7 + $0x18] sm:$0xff]  ;;  %v428_v32 = vld [vmem:[#allocation7 + $0xa0] sm:$0xff] }
  0xbe   : > { %2082 = vmatprep.subr.bf16.mxu1 %v2081_v18 }
  0xbf   : > { %2052 = vmatpush1.bf16.msra.mxu0 %v2051_v37  ;;  %v394_v37 = vld [vmem:[#allocation5 + $0x590] sm:$0xff] }
  0xc0   : > { %2054 = vmatprep.subr.bf16.mxu0 %v2053_v38  ;;  %v406_v38 = vld [vmem:[#allocation5 + $0x5f0] sm:$0xff] }
  0xc1   : > { %2084 = vmatpush1.bf16.msra.mxu1 %v2083_v23  ;;  %v2095_v39 = vpack.c.bf16 %v406_v38, %v394_v37  ;;  %v408_v23 = vld [vmem:[#allocation7] sm:$0xff]  ;;  %v413_v37 = vld [vmem:[#allocation7 + $0x28] sm:$0xff]  ;;  %v430_v38 = vld [vmem:[#allocation7 + $0xb0] sm:$0xff] }
  0xc2   : > { %2086 = vmatprep.subr.bf16.mxu1 %v2085_v24  ;;  %v2097_v24 = vpack.c.bf16 %v425_v22, %v424_v21  ;;  %v2099_v28 = vpack.c.bf16 %v409_v25, %v408_v23  ;;  %v442_v23 = vld [vmem:[#allocation7 + $0x110] sm:$0xff]  ;;  %v460_v25 = vld [vmem:[#allocation7 + $0x1a0] sm:$0xff] }
  0xc3   : > { %2056 = vmatpush1.bf16.msra.mxu0 %v2055_v44 }
  0xc4   : > { %2058 = vmatprep.subr.bf16.mxu0 %v2057_v45 }
  0xc5   : > { %2088 = vmatpush1.bf16.msra.mxu1 %v2087_v29  ;;  %v2101_v29 = vpack.c.bf16 %v427_v27, %v426_v26  ;;  %v461_v26 = vld [vmem:[#allocation7 + $0x1a8] sm:$0xff] }
  0xc6   : > { %2090 = vmatprep.subr.bf16.mxu1 %v2089_v30  ;;  %v410_v30 = vld [vmem:[#allocation7 + $0x10] sm:$0xff] }
  0xc7   : > { %2060 = vmatpush1.bf16.msra.mxu0 %v2059_v50  ;;  %v2103_v34 = vpack.c.bf16 %v411_v31, %v410_v30  ;;  %v462_v30 = vld [vmem:[#allocation7 + $0x1b0] sm:$0xff]  ;;  %v463_v31 = vld [vmem:[#allocation7 + $0x1b8] sm:$0xff] }
  0xc8   : > { %2062 = vmatprep.subr.bf16.mxu0 %v2061_v51 }
  0xc9   : > { %2092 = vmatpush1.bf16.msra.mxu1 %v2091_v35  ;;  %v2105_v35 = vpack.c.bf16 %v429_v33, %v428_v32  ;;  %v446_v32 = vld [vmem:[#allocation7 + $0x130] sm:$0xff]  ;;  %v447_v33 = vld [vmem:[#allocation7 + $0x138] sm:$0xff] }
  0xca   : > { %2094 = vmatprep.subr.bf16.mxu1 %v2093_v36  ;;  %v412_v36 = vld [vmem:[#allocation7 + $0x20] sm:$0xff] }
  0xcb   : > { %2064 = vmatpush1.bf16.msra.mxu0 %v2063_v54 }
  0xcc   : > { %1865 = vmatprep.subr.mxu0 %v2415_v0 }
  0xcd   : > { %2096 = vmatpush1.bf16.msra.mxu1 %v2095_v39  ;;  %v431_v39 = vld [vmem:[#allocation7 + $0xb8] sm:$0xff] }
  0xce   : > { %821 = vmatmul.mubr.f32.vlgmr.msra.gmra.mrb[4].mxu0 %v2626_v42  ;;  %1870 = vmatprep.subr.mxu1 %v2415_v0 }
  0xcf   : > { %1867 = vmatprep.mubr.msk.f32.mxu0 %vm2416_vm0, %v2415_v0 }
  0xd0   : > { %892 = vmatmul.mubr.f32.vlgmr.msra.gmra.mrb[4].mxu1 %v2626_v42 }
  0xd1   : > { %1872 = vmatprep.mubr.msk.f32.mxu1 %vm2416_vm0, %v2415_v0 }
 0x161   : > { %v538_v40 = vpop.f32.mrb[0].mxu0 }
 0x162   : > { %v540_v41 = vpop.f32.mrb[1].mxu0 }
 0x163   : > { %v609_v43 = vpop.f32.mrb[0].mxu1 }
 0x164   : > { %v611_v44 = vpop.f32.mrb[1].mxu1 }
 0x181   : > { %v680_v45 = vpop.f32.mrb[2].mxu0 }
 0x182   : > { %v682_v46 = vpop.f32.mrb[3].mxu0  ;;  %1866 = vmatpush3.xpose.msra.mxu0 %v680_v45  ;;  %v432_v45 = vld [vmem:[#allocation7 + $0xc0] sm:$0xff] }
 0x183   : > { %1875 = vmatprep.subr.mxu0 %v2415_v0  ;;  %v751_v47 = vpop.f32.mrb[2].mxu1 }
 0x184   : > { %v753_v48 = vpop.f32.mrb[3].mxu1 }
 0x185   : > { %1868 = vmatmul.mubr.f32.vlgmr.msra.gmra.mrb[6].mxu0 %v538_v40  ;;  %v2107_v40 = vpack.c.bf16 %v413_v37, %v412_v36  ;;  %v2143_v36 = vpack.c.bf16 %v447_v33, %v446_v32 }
 0x186   : > { %1876 = vmatpush3.xpose.msra.mxu0 %v682_v46  ;;  %1877 = vmatprep.mubr.msk.f32.mxu0 %vm2416_vm0, %v2415_v0  ;;  %v433_v46 = vld [vmem:[#allocation7 + $0xc8] sm:$0xff] }
 0x187   : > { %1885 = vmatprep.subr.mxu0 %v2415_v0 }
 0x189   : > { %1878 = vmatmul.mubr.f32.vlgmr.msra.gmra.mrb[8].mxu0 %v540_v41  ;;  %v2109_v41 = vpack.c.bf16 %v431_v39, %v430_v38  ;;  %v448_v38 = vld [vmem:[#allocation7 + $0x140] sm:$0xff]  ;;  %v449_v39 = vld [vmem:[#allocation7 + $0x148] sm:$0xff] }
 0x18a   : > { %1886 = vmatpush3.xpose.msra.mxu0 %v751_v47  ;;  %1887 = vmatprep.mubr.msk.f32.mxu0 %vm2416_vm0, %v2415_v0 }
 0x18b   : > { %1895 = vmatprep.subr.mxu0 %v2415_v0 }
 0x18d   : > { %1888 = vmatmul.mubr.f32.vlgmr.msra.gmra.mrb[10].mxu0 %v609_v43  ;;  %v414_v43 = vld [vmem:[#allocation7 + $0x30] sm:$0xff] }
 0x18e   : > { %1896 = vmatpush3.xpose.msra.mxu0 %v753_v48  ;;  %1897 = vmatprep.mubr.msk.f32.mxu0 %vm2416_vm0, %v2415_v0  ;;  %v2113_v48 = vpack.c.bf16 %v433_v46, %v432_v45  ;;  %v467_v46 = vld [vmem:[#allocation7 + $0x1d8] sm:$0xff] }
 0x18f   : > { %2098 = vmatprep.subr.bf16.mxu0 %v2097_v24  ;;  %v443_v24 = vld [vmem:[#allocation7 + $0x118] sm:$0xff] }
 0x190   : > { %v2135_v27 = vpack.c.bf16 %v443_v24, %v442_v23 }
 0x191   : > { %1898 = vmatmul.mubr.f32.vlgmr.msra.gmra.mrb[12].mxu0 %v611_v44  ;;  %v415_v44 = vld [vmem:[#allocation7 + $0x38] sm:$0xff] }
 0x192   : > { %2100 = vmatpush3.bf16.msra.mxu0 %v2099_v28  ;;  %v2111_v47 = vpack.c.bf16 %v415_v44, %v414_v43  ;;  %v2137_v28 = vpack.c.bf16 %v461_v26, %v460_v25  ;;  %v439_v43 = vld [vmem:[#allocation7 + $0xf8] sm:$0xff]  ;;  %v466_v44 = vld [vmem:[#allocation7 + $0x1d0] sm:$0xff] }
 0x193   : > { %2102 = vmatprep.subr.bf16.mxu0 %v2101_v29  ;;  %v444_v29 = vld [vmem:[#allocation7 + $0x120] sm:$0xff] }
 0x196   : > { %2104 = vmatpush3.bf16.msra.mxu0 %v2103_v34  ;;  %v464_v34 = vld [vmem:[#allocation7 + $0x1c0] sm:$0xff] }
 0x197   : > { %2106 = vmatprep.subr.bf16.mxu0 %v2105_v35  ;;  %v465_v35 = vld [vmem:[#allocation7 + $0x1c8] sm:$0xff] }
 0x198   : > { %v2145_v37 = vpack.c.bf16 %v465_v35, %v464_v34 }
 0x19a   : > { %2108 = vmatpush3.bf16.msra.mxu0 %v2107_v40  ;;  %v2147_v40 = vpack.c.bf16 %v449_v39, %v448_v38 }
 0x19b   : > { %2110 = vmatprep.subr.bf16.mxu0 %v2109_v41  ;;  %v438_v41 = vld [vmem:[#allocation7 + $0xf0] sm:$0xff] }
 0x19c   : > { %v2125_v45 = vpack.c.bf16 %v439_v43, %v438_v41 }
 0x19e   : > { %2112 = vmatpush3.bf16.msra.mxu0 %v2111_v47  ;;  %v422_v47 = vld [vmem:[#allocation7 + $0x70] sm:$0xff] }
 0x19f   : > { %2114 = vmatprep.subr.bf16.mxu0 %v2113_v48  ;;  %v423_v48 = vld [vmem:[#allocation7 + $0x78] sm:$0xff] }
 0x1a1   : > { %v822_v42 = vpop.f32.mrb[4].mxu0 }
 0x1a2   : > { %v2653_v49 = vpop.f32.mrb[5].mxu0  ;;  %1871 = vmatpush3.msra.mxu1 %v822_v42  ;;  %v416_v42 = vld [vmem:[#allocation7 + $0x40] sm:$0xff] }
 0x1a3   : > { %1880 = vmatprep.subr.mxu1 %v2415_v0  ;;  %v2676_v19 = vpop.f32.mrb[4].mxu1 }
 0x1a4   : > { %v2678_v20 = vpop.f32.mrb[5].mxu1 }
 0x258   : > { %v964_v50 = vpop.f32.mrb[6].mxu0 }
 0x259   : > { %v1869_v51 = vpop.f32.mrb[7].mxu0  ;;  %v969_v52 = vsel %vm968_vm1, %v964_v50, -inf }
 0x25a   : > { %970 = vmax.xlane.f32.xlu0 %v969_v52  ;;  %v434_v51 = vld [vmem:[#allocation7 + $0xd0] sm:$0xff]  ;;  %v435_v52 = vld [vmem:[#allocation7 + $0xd8] sm:$0xff] }
 0x25c   : > { %v1119_v53 = vpop.f32.mrb[8].mxu0 }
 0x25d   : > { %v1879_v54 = vpop.f32.mrb[9].mxu0  ;;  %v1123_v55 = vsel %vm968_vm1, %v1119_v53, -inf }
 0x25e   : > { %1124 = vmax.xlane.f32.xlu0 %v1123_v55  ;;  %v2117_v54 = vpack.c.bf16 %v435_v52, %v434_v51  ;;  %v418_v55 = vld [vmem:[#allocation7 + $0x50] sm:$0xff]  ;;  %v451_v52 = vld [vmem:[#allocation7 + $0x158] sm:$0xff] }
 0x25f   : > { %v450_v51 = vld [vmem:[#allocation7 + $0x150] sm:$0xff] }
 0x260   : > { %v1273_v56 = vpop.f32.mrb[10].mxu0 }
 0x261   : > { %v1889_v57 = vpop.f32.mrb[11].mxu0  ;;  %v1277_v58 = vsel %vm968_vm1, %v1273_v56, -inf }
 0x262   : > { %1278 = vmax.xlane.f32.xlu1 %v1277_v58  ;;  %v436_v57 = vld [vmem:[#allocation7 + $0xe0] sm:$0xff]  ;;  %v437_v58 = vld [vmem:[#allocation7 + $0xe8] sm:$0xff] }
 0x264   : > { %v1427_v59 = vpop.f32.mrb[12].mxu0 }
 0x265   : > { %v1899_v60 = vpop.f32.mrb[13].mxu0  ;;  %v1431_v61 = vsel %vm968_vm1, %v1427_v59, -inf }
 0x266   : > { %1432 = vmax.xlane.f32.xlu1 %v1431_v61  ;;  %v2121_v60 = vpack.c.bf16 %v437_v58, %v436_v57  ;;  %v420_v61 = vld [vmem:[#allocation7 + $0x60] sm:$0xff]  ;;  %v453_v58 = vld [vmem:[#allocation7 + $0x168] sm:$0xff] }
 0x267   : > { %v452_v57 = vld [vmem:[#allocation7 + $0x160] sm:$0xff] }
 0x2e7   : > { %v971_v62 = vpop.xlane.xlu0 %970 }
 0x2e8   : > { %v972_v63 = vsub.f32 %v964_v50, %v971_v62  ;;  %v417_v50 = vld [vmem:[#allocation7 + $0x48] sm:$0xff] }
 0x2e9   : > { %v421_v62 = vld [vmem:[#allocation7 + $0x68] sm:$0xff] }
 0x2ea   : > { %v973_v1 = vmul.f32 1.442695, %v972_v63  ;;  %v2123_v63 = vpack.c.bf16 %v421_v62, %v420_v61  ;;  %v471_v61 = vld [vmem:[#allocation7 + $0x1f8] sm:$0xff] }
 0x2eb   : > { %v1125_v2 = vpop.xlane.xlu0 %1124 }
 0x2ec   : > { %2234 = vpow2.f32 %v973_v1  ;;  %v1126_v3 = vsub.f32 %v1119_v53, %v1125_v2  ;;  %v2115_v53 = vpack.c.bf16 %v417_v50, %v416_v42  ;;  %v2149_v42 = vpack.c.bf16 %v467_v46, %v466_v44 }
 0x2ed   : > { %v2127_v50 = vpack.c.bf16 %v423_v48, %v422_v47 }
 0x2ee   : > { %v1127_v4 = vmul.f32 1.442695, %v1126_v3  ;;  %2116 = vmatpush3.bf16.msra.mxu0 %v2115_v53  ;;  %v2151_v53 = vpack.c.bf16 %v451_v52, %v450_v51 }
 0x2ef   : > { %v1279_v5 = vpop.xlane.xlu1 %1278  ;;  %2118 = vmatprep.subr.bf16.mxu0 %v2117_v54  ;;  %v468_v54 = vld [vmem:[#allocation7 + $0x1e0] sm:$0xff] }
 0x2f0   : > { %2236 = vpow2.f32 %v1127_v4  ;;  %v1280_v6 = vsub.f32 %v1273_v56, %v1279_v5  ;;  %v419_v56 = vld [vmem:[#allocation7 + $0x58] sm:$0xff] }
 0x2f2   : > { %v1281_v7 = vmul.f32 1.442695, %v1280_v6 }
 0x2f3   : > { %v1433_v8 = vpop.xlane.xlu1 %1432 }
 0x2f4   : > { %2238 = vpow2.f32 %v1281_v7  ;;  %v1434_v9 = vsub.f32 %v1427_v59, %v1433_v8  ;;  %v2119_v59 = vpack.c.bf16 %v419_v56, %v418_v55  ;;  %v469_v55 = vld [vmem:[#allocation7 + $0x1e8] sm:$0xff] }
 0x2f5   : > { %v2153_v56 = vpack.c.bf16 %v469_v55, %v468_v54 }
 0x2f6   : > { %v2660_v10 = vpop.eup %2234  ;;  %v1435_v11 = vmul.f32 1.442695, %v1434_v9  ;;  %2120 = vmatpush3.bf16.msra.mxu0 %v2119_v59  ;;  %v456_v9 = vld [vmem:[#allocation7 + $0x180] sm:$0xff]  ;;  %v2155_v59 = vpack.c.bf16 %v453_v58, %v452_v57 }
 0x2f7   : > { %v975_v12 = vsel %vm968_vm1, %v2660_v10, 0.0  ;;  %2122 = vmatprep.subr.bf16.mxu0 %v2121_v60  ;;  %v470_v60 = vld [vmem:[#allocation7 + $0x1f0] sm:$0xff] }
 0x2f8   : > { %2240 = vpow2.f32 %v1435_v11  ;;  %976 = vadd.xlane.f32.xlu0 %v975_v12  ;;  %v457_v11 = vld [vmem:[#allocation7 + $0x188] sm:$0xff]  ;;  %v2157_v62 = vpack.c.bf16 %v471_v61, %v470_v60 }
 0x2fa   : > { %v2664_v13 = vpop.eup %2236  ;;  %2124 = vmatpush3.bf16.msra.mxu0 %v2123_v63  ;;  %v454_v63 = vld [vmem:[#allocation7 + $0x170] sm:$0xff] }
 0x2fb   : > { %v1129_v14 = vsel %vm968_vm1, %v2664_v13, 0.0  ;;  %2126 = vmatprep.subr.bf16.mxu0 %v2125_v45 }
 0x2fc   : > { %1130 = vadd.xlane.f32.xlu1 %v1129_v14  ;;  %v440_v14 = vld [vmem:[#allocation7 + $0x100] sm:$0xff] }
 0x2fe   : > { %v2668_v15 = vpop.eup %2238  ;;  %2128 = vmatpush3.bf16.msra.mxu0 %v2127_v50 }
 0x2ff   : > { %v1283_v16 = vsel %vm968_vm1, %v2668_v15, 0.0 }
 0x300   : > { %1284 = vadd.xlane.f32.xlu0 %v1283_v16  ;;  %v441_v16 = vld [vmem:[#allocation7 + $0x108] sm:$0xff] }
 0x302   : > { %v2672_v17 = vpop.eup %2240 }
 0x303   : > { %v1437_v18 = vsel %vm968_vm1, %v2672_v17, 0.0 }
 0x304   : > { %1438 = vadd.xlane.f32.xlu1 %v1437_v18  ;;  %v459_v18 = vld [vmem:[#allocation7 + $0x198] sm:$0xff] }
 0x385   : > { %v977_v1 = vpop.xlane.xlu0 %976 }
 0x386   : > { %2242 = vrcp.f32 %v977_v1  ;;  %v455_v1 = vld [vmem:[#allocation7 + $0x178] sm:$0xff] }
 0x389   : > { %v1131_v2 = vpop.xlane.xlu1 %1130 }
 0x38a   : > { %2244 = vrcp.f32 %v1131_v2  ;;  %v2159_v2 = vpack.c.bf16 %v455_v1, %v454_v63 }
 0x38d   : > { %v1285_v3 = vpop.xlane.xlu0 %1284 }
 0x38e   : > { %2246 = vrcp.f32 %v1285_v3 }
 0x390   : > { %v2243_v4 = vpop.eup %2242 }
 0x391   : > { %v979_v5 = vmul.f32 %v2243_v4, %v2660_v10  ;;  %v1439_v6 = vpop.xlane.xlu1 %1438 }
 0x392   : > { %2248 = vrcp.f32 %v1439_v6 }
 0x393   : > { %1873 = vmatmul.mubr.msk.f32.vlgmr.msra.gmra.mrb[6].mxu1 %vm968_vm1, %v979_v5 }
 0x394   : > { %v2245_v7 = vpop.eup %2244  ;;  %1881 = vmatpush3.msra.mxu1 %v2653_v49  ;;  %1882 = vmatprep.mubr.msk.f32.mxu1 %vm2416_vm0, %v2415_v0  ;;  %v2129_v49 = vpack.c.bf16 %v457_v11, %v456_v9 }
 0x395   : > { %v1133_v8 = vmul.f32 %v2245_v7, %v2664_v13  ;;  %1890 = vmatprep.subr.mxu1 %v2415_v0  ;;  %v458_v13 = vld [vmem:[#allocation7 + $0x190] sm:$0xff] }
 0x397   : > { %1883 = vmatmul.mubr.msk.f32.vlgmr.msra.gmra.mrb[8].mxu1 %vm968_vm1, %v1133_v8 }
 0x398   : > { %v2247_v12 = vpop.eup %2246  ;;  %1891 = vmatpush3.msra.mxu1 %v2676_v19  ;;  %1892 = vmatprep.mubr.msk.f32.mxu1 %vm2416_vm0, %v2415_v0  ;;  %v2131_v19 = vpack.c.bf16 %v441_v16, %v440_v14 }
 0x399   : > { %v1287_v10 = vmul.f32 %v2247_v12, %v2668_v15  ;;  %1900 = vmatprep.subr.mxu1 %v2415_v0  ;;  %v2133_v15 = vpack.c.bf16 %v459_v18, %v458_v13 }
 0x39b   : > { %1893 = vmatmul.mubr.msk.f32.vlgmr.msra.gmra.mrb[10].mxu1 %vm968_vm1, %v1287_v10 }
 0x39c   : > { %v2249_v21 = vpop.eup %2248  ;;  %1901 = vmatpush3.msra.mxu1 %v2678_v20  ;;  %1902 = vmatprep.mubr.msk.f32.mxu1 %vm2416_vm0, %v2415_v0  ;;  %v445_v20 = vld [vmem:[#allocation7 + $0x128] sm:$0xff] }
 0x39d   : > { %v1441_v22 = vmul.f32 %v2249_v21, %v2672_v17  ;;  %2130 = vmatprep.subr.bf16.mxu1 %v2129_v49  ;;  %v2139_v0 = vpack.c.bf16 %v445_v20, %v444_v29  ;;  %v2141_v17 = vpack.c.bf16 %v463_v31, %v462_v30 }
 0x39f   : > { %1903 = vmatmul.mubr.msk.f32.vlgmr.msra.gmra.mrb[12].mxu1 %vm968_vm1, %v1441_v22 }
 0x3a0   : > { %2132 = vmatpush3.bf16.msra.mxu1 %v2131_v19 }
 0x3a1   : > { %2134 = vmatprep.subr.bf16.mxu1 %v2133_v15 }
 0x3a4   : > { %2136 = vmatpush3.bf16.msra.mxu1 %v2135_v27 }
 0x3a5   : > { %2138 = vmatprep.subr.bf16.mxu1 %v2137_v28 }
 0x3a8   : > { %2140 = vmatpush3.bf16.msra.mxu1 %v2139_v0 }
 0x3a9   : > { %2142 = vmatprep.subr.bf16.mxu1 %v2141_v17 }
 0x3ac   : > { %2144 = vmatpush3.bf16.msra.mxu1 %v2143_v36 }
 0x3ad   : > { %2146 = vmatprep.subr.bf16.mxu1 %v2145_v37 }
 0x3b0   : > { %2148 = vmatpush3.bf16.msra.mxu1 %v2147_v40 }
 0x3b1   : > { %2150 = vmatprep.subr.bf16.mxu1 %v2149_v42 }
 0x3b4   : > { %2152 = vmatpush3.bf16.msra.mxu1 %v2151_v53 }
 0x3b5   : > { %2154 = vmatprep.subr.bf16.mxu1 %v2153_v56 }
 0x3b8   : > { %2156 = vmatpush3.bf16.msra.mxu1 %v2155_v59 }
 0x3b9   : > { %2158 = vmatprep.subr.bf16.mxu1 %v2157_v62 }
 0x3bc   : > { %2160 = vmatpush3.bf16.msra.mxu1 %v2159_v2 }
 0x466   : > { %v1049_v3 = vpop.f32.mrb[6].mxu1 }
 0x467   : > { %v1874_v4 = vpop.f32.mrb[7].mxu1 }
 0x46a   : > { %v1203_v5 = vpop.f32.mrb[8].mxu1 }
 0x46b   : > { %v1884_v6 = vpop.f32.mrb[9].mxu1  ;;  %1579 = vmatprep.mubr.f32.mxu0 %v1203_v5 }
 0x46c   : > { %1580 = vmatmul.mubr.f32.vlgmr.msra.gmra.mrb[14].mxu0 %v1049_v3 }
 0x46e   : > { %v1357_v7 = vpop.f32.mrb[10].mxu1 }
 0x46f   : > { %v1894_v8 = vpop.f32.mrb[11].mxu1 }
 0x472   : > { %v1511_v9 = vpop.f32.mrb[12].mxu1 }
 0x473   : > { %v1904_v11 = vpop.f32.mrb[13].mxu1  ;;  %1649 = vmatprep.mubr.f32.mxu1 %v1511_v9 }
 0x474   : > { %1650 = vmatmul.mubr.f32.vlgmr.msra.gmra.mrb[14].mxu1 %v1357_v7 }
 0x53f   : > { %v1827_v12 = vpop.f32.mrb[14].mxu0 }
 0x540   : > { %v1828_v10 = vpop.f32.mrb[15].mxu0 }
 0x541   : > { %v1829_v49 = vadd.f32 %v1828_v10, %v1827_v12 }
 0x547   : > { %v1862_v14 = vpop.f32.mrb[14].mxu1 }
 0x548   : > { %v1863_v16 = vpop.f32.mrb[15].mxu1 }
 0x549   : > { %v1864_v13 = vadd.f32 %v1863_v16, %v1862_v14 }
 0x54b   : > { %v1652_v18 = vadd.f32 %v1864_v13, %v1829_v49 }
 0x54d   : > { %1655 = vst [vmem:[%s214_s20] sm:$0xff] %v1652_v18 }
 0x54e   : > { %2349 = shalt.err (!%p2346_p2)
}
 0x54f   : > { %s2350_s23 = scalar_lea.hbm %s2705_s22, 128  ;;  %s2354_s17 = scalar_lea.hbm %s2752_s3, 256 }
 0x550   : > { %p2351_p13 = scmp.ne.s32.totalorder %s2705_s22, %s2350_s23  ;;  %p2355_p4 = scmp.lt.u32.totalorder %s2705_s22, %s2752_s3 }
 0x551   : > { %p2356_p7 = scmp.lt.u32.totalorder %s2354_s17, %s2350_s23  ;;  %p2358_p11 = scmp.lt.u32.totalorder %s2350_s23, %s2705_s22 }
 0x552   : > { %p2352_p6 = pnand %p2351_p13, %p2766_p0 }
 0x553   : > { %p2357_p8 = por %p2356_p7, %p2355_p4 }
 0x554   : > { %p2353_p10 = pneg %p2352_p6 }
 0x555   : > { %p2359_p1 = por %p2358_p11, %p2357_p8 }
 0x557   : > { %p2360_p3 = pnand %p2359_p1, %p2353_p10 }
 0x559   : > { %2363 = shalt.err (!%p2360_p3)
}
 0x55a   : > { %2171 = dma.vmem_to_hbm [thread:$0]  (%p2766_p0), %s2707_s24, 128, %s2705_s22, %s1657_s4  }
 0x55b PF: > { %s1682_s29 = sand.u32 1, %s2394_s12   ;;  %p2767_p5 = scmp.ne.s32.totalorder %s2757_s19, 0 }
 0x55c   : > { %p2768_p9 = scmp.ge.s32.totalorder %s2406_s15, 2  ;;  %s1683_s30 = scalar_lea.sflag [#allocation4], %s1682_s29 }
 0x55e   : > { %p2185_p12 = pnand %p2768_p9, %p2767_p5 }
 0x560   : > { %2389 = dma.done.wait (!%p2185_p12), %s1683_s30, 128  }
 0x561   : > { %2391 = vsyncadd (!%p2185_p12), %s1683_s30, 4294967168  ;;  %p17_p2 = scmp.ge.s32.totalorder %s2548_s6, 4   ;;  %s2769_s12 = smov %s2398_s13 }
 0x562   : > { %s2770_s13 = smov %s2402_s14  ;;  %s2771_s14 = smov %s2557_s9 }
 0x563   : > { %s2772_s15 = smov %s2548_s6  ;;  %19 = sbr.rel (!%p17_p2) target bundleno = 6 (0x6), region = 85 }
 0x56a   :  { %1688 = vsyncpa [#allocation3], 1 }
 0x56b   :  { %1690 = vsyncpa [#allocation3 + $0x1], 1 }
 0x56c   :  { %1691 = vsyncpa [#allocation6], 1 }
 0x56d   :  { %1692 = vsyncpa [#allocation4], 1 }
 0x56e   :  { %1694 = vsyncpa [#allocation4 + $0x1], 1 }

// kernel: tpu_custom_call.1
= control target key start
LH: loop header
LB: loop body
LE: loop exit
PB: predicated region body
PF: predicated region fallthrough
CT: control target
= control target key end

     0   :  { %8 = vsyncpa [#allocation3], 0  ;;  %s2749_s0 = inlined_call_operand.hbm [shape: f32[2,8,128], index: 0, kind: input, shape index: {}]   ;;  %s2750_s1 = inlined_call_operand.hbm [shape: f32[128,1536], index: 1, kind: input, shape index: {}]   ;;  %s2751_s2 = inlined_call_operand.hbm [shape: f32[512,128], index: 2, kind: input, shape index: {}]   ;;  %s2752_s3 = inlined_call_operand.hbm [shape: f32[2,8,128], index: 3, kind: output, shape index: {}]  }
   0x1   :  { %10 = vsyncpa [#allocation3 + $0x1], 0 }
   0x2   :  { %11 = vsyncpa [#allocation6], 0 }
   0x3   :  { %12 = vsyncpa [#allocation4], 0 }
   0x4   :  { %14 = vsyncpa [#allocation4 + $0x1], 0  ;;  %s2438_s12 = smov 0   ;;  %s2440_s13 = smov 0  }
   0x5   :  { %s2442_s14 = smov 0   ;;  %s2444_s15 = smov 0  }
   0x6 LB: > { %s2459_s16 = sadd.s32 4294967295, %s2406_s15   ;;  %s1759_s17 = sadd.s32 4294967294, %s2406_s15   ;;  %s2406_s15 = sphi %s2444_s15, %s2772_s15   ;;  %s2402_s14 = sphi %s2442_s14, %s2771_s14   ;;  %s2398_s13 = sphi %s2440_s13, %s2770_s13   ;;  %s2394_s12 = sphi %s2438_s12, %s2769_s12  }
   0x7   : > { %p40_p0 = scmp.ne.s32.totalorder %s2398_s13, %s2394_s12  ;;  %p2753_p1 = scmp.eq.s32.totalorder %s2459_s16, 0 }
   0x8   : > { %p112_p3 = scmp.eq.s32.totalorder %s1759_s17, 1  ;;  %p1760_p5 = scmp.ge.s32.totalorder %s2406_s15, 1 }
   0x9   : > { %p2468_p4 = por %p2753_p1, %p40_p0  ;;  %p119_p7 = scmp.lt.s32.totalorder %s2406_s15, 3 }
   0xa   : > { %p2473_p6 = por %p112_p3, %p40_p0  ;;  %s2408_s21 = smov [#allocation5]  }
   0xb   : > { %s2756_s18 = scalar_select %p2468_p4, 1, 0 }
   0xc   : > { %s2757_s19 = scalar_select %p2473_p6, 1, 0 }
   0xd   : > { %p2478_p8 = pnand %p1760_p5, %p119_p7  ;;  %s131_s22 = sshll.u32 %s2408_s21, 4  ;;  %s2482_s22 = int_to_ptr.vmem [resolvable:$true] %s131_s22 }
   0xe   : > { %s2409_s24 = smov [#allocation7]   ;;  %s2250_s28 = scalar_lea.hbm %s2750_s1, 24576 }
   0xf   : > { %p2173_p9 = pneg %p2478_p8  ;;  %s144_s25 = sshll.u32 %s2409_s24, 4  ;;  %s2493_s25 = int_to_ptr.vmem [resolvable:$true] %s144_s25 }
  0x10   : > { %p2251_p12 = scmp.ne.s32.totalorder %s2750_s1, %s2250_s28  ;;  %p2257_p5 = scmp.lt.u32.totalorder %s2250_s28, %s2750_s1 }
  0x11   : > { %p2489_p11 = pnand %p2173_p9, %p2753_p1 }
  0x13   : > { %p2252_p13 = pneg %p2489_p11 }
  0x15   : > { %p2253_p0 = pnand %p2252_p13, %p2251_p12 }
  0x17   : > { %p2254_p3 = pneg %p2253_p0 }
  0x19   : > { %p2259_p7 = pnand %p2257_p5, %p2254_p3 }
  0x1b   : > { %2262 = shalt.err (!%p2259_p7)
}
  0x1c   : > { %s2263_s6 = scalar_lea.vmem %s2482_s22, 24576  ;;  %p2271_p2 = scmp.lt.s32.totalorder %s2482_s22, %s2482_s22 }
  0x1d   : > { %p2264_p9 = scmp.ne.s32.totalorder %s2482_s22, %s2263_s6  ;;  %p2272_p12 = scmp.lt.s32.totalorder %s2263_s6, %s2263_s6 }
  0x1f   : > { %p2266_p10 = pnand %p2264_p9, %p2252_p13  ;;  %p2273_p0 = por %p2272_p12, %p2271_p2 }
  0x21   : > { %p2267_p1 = pneg %p2266_p10 }
  0x23   : > { %p2274_p6 = pnand %p2273_p0, %p2267_p1 }
  0x25   : > { %2277 = shalt.err (!%p2274_p6)
}
  0x26   : > { %s2410_s7 = smov 1536   ;;  %s2411_s8 = smov 96  }
  0x27   : > { %2176 = dma.hbm_to_vmem [thread:$0]  (!%p2489_p11), %s2750_s1, 24576, %s2482_s22, [#allocation6], %s2410_s7, %s2410_s7, %s2411_s8  }
  0x28   : > { %s2278_s21 = scalar_lea.hbm %s2751_s2, 8192 }
  0x29   : > { %p2279_p2 = scmp.ne.s32.totalorder %s2751_s2, %s2278_s21  ;;  %p2285_p10 = scmp.lt.u32.totalorder %s2278_s21, %s2751_s2 }
  0x2b   : > { %p2281_p1 = pnand %p2279_p2, %p2252_p13 }
  0x2d   : > { %p2282_p6 = pneg %p2281_p1 }
  0x2f   : > { %p2287_p3 = pnand %p2285_p10, %p2282_p6 }
  0x31   : > { %2290 = shalt.err (!%p2287_p3)
}
  0x32   : > { %s2291_s22 = scalar_lea.vmem %s2493_s25, 8192  ;;  %p2299_p12 = scmp.lt.s32.totalorder %s2493_s25, %s2493_s25 }
  0x33   : > { %p2292_p5 = scmp.ne.s32.totalorder %s2493_s25, %s2291_s22  ;;  %p2300_p0 = scmp.lt.s32.totalorder %s2291_s22, %s2291_s22 }
  0x35   : > { %p2294_p7 = pnand %p2292_p5, %p2252_p13  ;;  %p2301_p2 = por %p2300_p0, %p2299_p12 }
  0x37   : > { %p2295_p9 = pneg %p2294_p7 }
  0x39   : > { %p2302_p1 = pnand %p2301_p2, %p2295_p9 }
  0x3b   : > { %2305 = shalt.err (!%p2302_p1)
}
  0x3c   : > { %s2412_s29 = smov 128   ;;  %s2413_s30 = smov 8  }
  0x3d   : > { %2179 = dma.hbm_to_vmem [thread:$0]  (!%p2489_p11), %s2751_s2, 8192, %s2493_s25, [#allocation6], %s2412_s29, %s2412_s29, %s2413_s30  }
  0x3e   : > { %s2548_s6 = sadd.s32 1, %s2406_s15   ;;  %s27_s8 = sadd.s32 1, %s2402_s14 }
  0x3f   : > { %s24_s7 = ssub.s32 %s2406_s15, %s2548_s6  ;;  %p34_p6 = scmp.ne.s32.totalorder %s2402_s14, %s2398_s13 }
  0x40   : > { %p25_p13 = scmp.eq.s32.totalorder %s24_s7, 0  ;;  %p35_p10 = scmp.eq.s32.totalorder %s2406_s15, 0 }
  0x41   : > { %p2760_p5 = scmp.eq.s32.totalorder %s2459_s16, 1  ;;  %p2190_p9 = scmp.lt.s32.totalorder %s2406_s15, 2 }
  0x42   : > { %s2557_s9 = scalar_select %p25_p13, %s2402_s14, %s27_s8  }
  0x43   : > { %p36_p3 = por %p35_p10, %p34_p6  ;;  %p2561_p7 = por %p2760_p5, %p34_p6 }
  0x44   : > { %s158_s23 = sand.u32 1, %s2402_s14   ;;  %s1765_s25 = sshll.u32 %s2406_s15, 7 }
  0x45   : > { %s2761_s10 = scalar_select %p2561_p7, 1, 0 }
  0x46   : > { %s1764_s11 = sshll.u32 %s158_s23, 3  ;;  %s2571_s24 = scalar_lea.hbm %s2749_s0, %s1765_s25 }
  0x47   : > { %s162_s26 = scalar_lea.vmem [#allocation2], %s1764_s11  ;;  %p2575_p11 = pnand %p2190_p9, %p36_p3 }
  0x48   : > { %s169_s27 = sshll.u32 %s162_s26, 4  ;;  %s159_s22 = scalar_lea.sflag [#allocation3], %s158_s23  ;;  %s2573_s27 = int_to_ptr.vmem [resolvable:$true] %s169_s27 }
  0x49   : > { %s2306_s29 = scalar_lea.hbm %s2571_s24, 128  ;;  %p2308_p0 = pneg %p2575_p11 }
  0x4a   : > { %p2307_p12 = scmp.ne.s32.totalorder %s2571_s24, %s2306_s29  ;;  %s2311_s5 = scalar_lea.hbm %s2749_s0, 256 }
  0x4b   : > { %p2312_p13 = scmp.lt.u32.totalorder %s2571_s24, %s2749_s0  ;;  %p2313_p6 = scmp.lt.u32.totalorder %s2311_s5, %s2306_s29 }
  0x4c   : > { %p2309_p2 = pnand %p2308_p0, %p2307_p12  ;;  %p2315_p3 = scmp.lt.u32.totalorder %s2306_s29, %s2571_s24 }
  0x4d   : > { %p2314_p10 = por %p2313_p6, %p2312_p13 }
  0x4e   : > { %p2310_p1 = pneg %p2309_p2 }
  0x4f   : > { %p2316_p5 = por %p2315_p3, %p2314_p10 }
  0x51   : > { %p2317_p9 = pnand %p2316_p5, %p2310_p1 }
  0x53   : > { %2320 = shalt.err (!%p2317_p9)
}
  0x54   : > { %s2321_s23 = scalar_lea.vmem %s2573_s27, 128  ;;  %s2414_s11 = smov [#allocation2]  }
  0x55   : > { %p2322_p12 = scmp.ne.s32.totalorder %s2573_s27, %s2321_s23  ;;  %s2326_s25 = sshll.u32 %s2414_s11, 4  ;;  %s2327_s25 = int_to_ptr.vmem [resolvable:$false] %s2326_s25 }
  0x56   : > { %s2328_s17 = scalar_lea.vmem %s2327_s25, 256  ;;  %p2329_p4 = scmp.lt.s32.totalorder %s2573_s27, %s2327_s25 }
  0x57   : > { %p2324_p2 = pnand %p2322_p12, %p2308_p0  ;;  %p2330_p13 = scmp.lt.s32.totalorder %s2328_s17, %s2321_s23 }
  0x59   : > { %p2325_p7 = pneg %p2324_p2  ;;  %p2331_p6 = por %p2330_p13, %p2329_p4 }
  0x5b   : > { %p2332_p10 = pnand %p2331_p6, %p2325_p7 }
  0x5d   : > { %2335 = shalt.err (!%p2332_p10)
}
  0x5e   : > { %2183 = dma.hbm_to_vmem [thread:$0]  (!%p2575_p11), %s2571_s24, 128, %s2573_s27, %s159_s22  }
  0x5f   : > { %178 = sbr.rel (%p2478_p8) target bundleno = 1371 (0x55b), region = 32  ;;  %s2607_s21 = sand.u32 (!%p2478_p8), 1, %s2398_s13  }
  0x60   : > { %s1767_s26 = sshll.u32 (!%p2478_p8), %s2607_s21, 3  ;;  %s181_s29 = scalar_lea.sflag (!%p2478_p8), [#allocation3], %s2607_s21 }
  0x61   : > { %s2613_s30 = scalar_lea.vmem (!%p2478_p8), [#allocation2], %s1767_s26  ;;  %p2763_p4 = scmp.ne.s32.totalorder (!%p2478_p8), %s2756_s18, 0 }
  0x66   : > { %2381 = dma.done.wait (%p2763_p4), %s181_s29, 128  }
  0x67   : > { %2383 = vsyncadd (%p2763_p4), %s181_s29, 4294967168  ;;  %p2764_p7 = scmp.eq.s32.totalorder %s2459_s16, 0 }
  0x69   : > { %2385 = dma.done.wait (%p2764_p7), [#allocation6], 32768   ;;  %p2765_p8 = pmov %p2764_p7 }
  0x6a   : > { %v2415_v0 = vmov 0.0   ;;  %v217_v1 = vld [vmem:[#allocation5 + $0x8] sm:$0xff]  ;;  %v216_v3 = vld [vmem:[#allocation5] sm:$0xff]  ;;  %v219_v12 = vld [vmem:[#allocation5 + $0x18] sm:$0xff]  ;;  %vm2416_vm0 = vmmov 0   ;;  %vm968_vm1 = vcmask 64512  }
  0x6b   : > { %2387 = vsyncadd (%p2765_p8), [#allocation6], 4294934528  ;;  %536 = vmatprep.mubr.f32.mxu0 %v2415_v0  ;;  %607 = vmatprep.mubr.f32.mxu1 %v2415_v0  ;;  %v229_v2 = vld [vmem:[#allocation5 + $0x68] sm:$0xff]  ;;  %v228_v5 = vld [vmem:[#allocation5 + $0x60] sm:$0xff]  ;;  %s1776_s18 = sshll.u32 %s2459_s16, 7  ;;  %s214_s20 = scalar_lea.vmem [#allocation8], %s1767_s26 }
  0x6c   : > { %v1905_v4 = vpack.c.bf16 %v229_v2, %v217_v1  ;;  %v241_v6 = vld [vmem:[#allocation5 + $0xc8] sm:$0xff]  ;;  %v1907_v8 = vpack.c.bf16 %v228_v5, %v216_v3  ;;  %v240_v10 = vld [vmem:[#allocation5 + $0xc0] sm:$0xff]  ;;  %v231_v13 = vld [vmem:[#allocation5 + $0x78] sm:$0xff]  ;;  %s1670_s24 = sshll.u32 %s214_s20, 4  ;;  %s2705_s22 = scalar_lea.hbm %s2752_s3, %s1776_s18  ;;  %s2707_s24 = int_to_ptr.vmem [resolvable:$true] %s1670_s24 }
  0x6d   : > { %v253_v7 = vld [vmem:[#allocation5 + $0x128] sm:$0xff]  ;;  %v252_v11 = vld [vmem:[#allocation5 + $0x120] sm:$0xff]  ;;  %v1937_v17 = vpack.c.bf16 %v231_v13, %v219_v12  ;;  %v218_v18 = vld [vmem:[#allocation5 + $0x10] sm:$0xff]  ;;  %s1657_s4 = scalar_lea.sflag [#allocation4], %s2607_s21  ;;  %s2336_s5 = scalar_lea.vmem %s2707_s24, 128 }
  0x6e   : > { %v1909_v9 = vpack.c.bf16 %v253_v7, %v241_v6  ;;  %1906 = vmatprep.subr.bf16.mxu0 %v1905_v4  ;;  %v265_v14 = vld [vmem:[#allocation5 + $0x188] sm:$0xff]  ;;  %v1911_v16 = vpack.c.bf16 %v252_v11, %v240_v10  ;;  %v230_v19 = vld [vmem:[#allocation5 + $0x70] sm:$0xff]  ;;  %v264_v20 = vld [vmem:[#allocation5 + $0x180] sm:$0xff]  ;;  %p2337_p11 = scmp.ne.s32.totalorder %s2707_s24, %s2336_s5  ;;  %p2766_p0 = scmp.ne.s32.totalorder %s2761_s10, 0 }
  0x6f   : > { %v277_v15 = vld [vmem:[#allocation5 + $0x1e8] sm:$0xff]  ;;  %1908 = vmatpush1.bf16.msra.mxu0 %v1907_v8  ;;  %v1939_v22 = vpack.c.bf16 %v230_v19, %v218_v18  ;;  %v276_v23 = vld [vmem:[#allocation5 + $0x1e0] sm:$0xff]  ;;  %v243_v24 = vld [vmem:[#allocation5 + $0xd8] sm:$0xff]  ;;  %1938 = vmatprep.subr.bf16.mxu1 %v1937_v17  ;;  %s2417_s16 = smov [#allocation8]  }
  0x70   : > { %1910 = vmatprep.subr.bf16.mxu0 %v1909_v9  ;;  %v1913_v21 = vpack.c.bf16 %v277_v15, %v265_v14  ;;  %v255_v25 = vld [vmem:[#allocation5 + $0x138] sm:$0xff]  ;;  %v289_v27 = vld [vmem:[#allocation5 + $0x248] sm:$0xff]  ;;  %v242_v29 = vld [vmem:[#allocation5 + $0xd0] sm:$0xff]  ;;  %v1915_v31 = vpack.c.bf16 %v276_v23, %v264_v20  ;;  %p2338_p1 = pnand %p2337_p11, %p2766_p0  ;;  %s2340_s7 = sshll.u32 %s2417_s16, 4  ;;  %s2341_s7 = int_to_ptr.vmem [resolvable:$false] %s2340_s7 }
  0x71   : > { %v1941_v26 = vpack.c.bf16 %v255_v25, %v243_v24  ;;  %v301_v28 = vld [vmem:[#allocation5 + $0x2a8] sm:$0xff]  ;;  %1940 = vmatpush1.bf16.msra.mxu1 %v1939_v22  ;;  %v254_v30 = vld [vmem:[#allocation5 + $0x130] sm:$0xff]  ;;  %v288_v33 = vld [vmem:[#allocation5 + $0x240] sm:$0xff]  ;;  %s2342_s8 = scalar_lea.vmem %s2341_s7, 256  ;;  %p2343_p5 = scmp.lt.s32.totalorder %s2707_s24, %s2341_s7 }
  0x72   : > { %v1943_v32 = vpack.c.bf16 %v254_v30, %v242_v29  ;;  %v267_v34 = vld [vmem:[#allocation5 + $0x198] sm:$0xff]  ;;  %v1917_v36 = vpack.c.bf16 %v301_v28, %v289_v27  ;;  %v300_v37 = vld [vmem:[#allocation5 + $0x2a0] sm:$0xff]  ;;  %v266_v39 = vld [vmem:[#allocation5 + $0x190] sm:$0xff]  ;;  %p2339_p3 = pneg %p2338_p1  ;;  %p2344_p9 = scmp.lt.s32.totalorder %s2342_s8, %s2336_s5 }
  0x73   : > { %1912 = vmatpush1.bf16.msra.mxu0 %v1911_v16  ;;  %1942 = vmatprep.subr.bf16.mxu1 %v1941_v26  ;;  %v279_v35 = vld [vmem:[#allocation5 + $0x1f8] sm:$0xff]  ;;  %v278_v40 = vld [vmem:[#allocation5 + $0x1f0] sm:$0xff]  ;;  %v313_v41 = vld [vmem:[#allocation5 + $0x308] sm:$0xff]  ;;  %v1919_v46 = vpack.c.bf16 %v300_v37, %v288_v33 }
  0x74   : > { %1914 = vmatprep.subr.bf16.mxu0 %v1913_v21  ;;  %v1945_v38 = vpack.c.bf16 %v279_v35, %v267_v34  ;;  %v325_v42 = vld [vmem:[#allocation5 + $0x368] sm:$0xff]  ;;  %v291_v43 = vld [vmem:[#allocation5 + $0x258] sm:$0xff]  ;;  %v1947_v44 = vpack.c.bf16 %v278_v40, %v266_v39  ;;  %v312_v47 = vld [vmem:[#allocation5 + $0x300] sm:$0xff]  ;;  %p2345_p12 = por %p2344_p9, %p2343_p5 }
  0x75   : > { %1944 = vmatpush1.bf16.msra.mxu1 %v1943_v32  ;;  %v303_v45 = vld [vmem:[#allocation5 + $0x2b8] sm:$0xff]  ;;  %v290_v49 = vld [vmem:[#allocation5 + $0x250] sm:$0xff]  ;;  %v1921_v51 = vpack.c.bf16 %v325_v42, %v313_v41  ;;  %v324_v52 = vld [vmem:[#allocation5 + $0x360] sm:$0xff] }
  0x76   : > { %1946 = vmatprep.subr.bf16.mxu1 %v1945_v38  ;;  %v1949_v48 = vpack.c.bf16 %v303_v45, %v291_v43  ;;  %v302_v50 = vld [vmem:[#allocation5 + $0x2b0] sm:$0xff]  ;;  %v315_v53 = vld [vmem:[#allocation5 + $0x318] sm:$0xff]  ;;  %v337_v55 = vld [vmem:[#allocation5 + $0x3c8] sm:$0xff]  ;;  %v1923_v58 = vpack.c.bf16 %v324_v52, %v312_v47  ;;  %p2346_p2 = pnand %p2345_p12, %p2339_p3 }
  0x77   : > { %1916 = vmatpush1.bf16.msra.mxu0 %v1915_v31  ;;  %v327_v54 = vld [vmem:[#allocation5 + $0x378] sm:$0xff]  ;;  %v349_v56 = vld [vmem:[#allocation5 + $0x428] sm:$0xff]  ;;  %v1951_v57 = vpack.c.bf16 %v302_v50, %v290_v49  ;;  %v336_v59 = vld [vmem:[#allocation5 + $0x3c0] sm:$0xff] }
  0x78   : > { %1918 = vmatprep.subr.bf16.mxu0 %v1917_v36  ;;  %v1953_v60 = vpack.c.bf16 %v327_v54, %v315_v53  ;;  %v314_v61 = vld [vmem:[#allocation5 + $0x310] sm:$0xff]  ;;  %v1925_v63 = vpack.c.bf16 %v349_v56, %v337_v55  ;;  %v348_v1 = vld [vmem:[#allocation5 + $0x420] sm:$0xff]  ;;  %v339_v2 = vld [vmem:[#allocation5 + $0x3d8] sm:$0xff] }
  0x79   : > { %1948 = vmatpush1.bf16.msra.mxu1 %v1947_v44  ;;  %v326_v62 = vld [vmem:[#allocation5 + $0x370] sm:$0xff]  ;;  %v351_v3 = vld [vmem:[#allocation5 + $0x438] sm:$0xff]  ;;  %v361_v4 = vld [vmem:[#allocation5 + $0x488] sm:$0xff]  ;;  %v1927_v7 = vpack.c.bf16 %v348_v1, %v336_v59 }
  0x7a   : > { %1950 = vmatprep.subr.bf16.mxu1 %v1949_v48  ;;  %v373_v5 = vld [vmem:[#allocation5 + $0x4e8] sm:$0xff]  ;;  %v1955_v6 = vpack.c.bf16 %v326_v62, %v314_v61  ;;  %v360_v8 = vld [vmem:[#allocation5 + $0x480] sm:$0xff]  ;;  %v1957_v9 = vpack.c.bf16 %v351_v3, %v339_v2  ;;  %v338_v10 = vld [vmem:[#allocation5 + $0x3d0] sm:$0xff] }
  0x7b   : > { %1920 = vmatpush1.bf16.msra.mxu0 %v1919_v46  ;;  %v350_v11 = vld [vmem:[#allocation5 + $0x430] sm:$0xff]  ;;  %v1929_v12 = vpack.c.bf16 %v373_v5, %v361_v4  ;;  %v372_v13 = vld [vmem:[#allocation5 + $0x4e0] sm:$0xff]  ;;  %v363_v14 = vld [vmem:[#allocation5 + $0x498] sm:$0xff] }
  0x7c   : > { %1922 = vmatprep.subr.bf16.mxu0 %v1921_v51  ;;  %v375_v15 = vld [vmem:[#allocation5 + $0x4f8] sm:$0xff]  ;;  %v385_v16 = vld [vmem:[#allocation5 + $0x548] sm:$0xff]  ;;  %v1959_v18 = vpack.c.bf16 %v350_v11, %v338_v10  ;;  %v1931_v19 = vpack.c.bf16 %v372_v13, %v360_v8  ;;  %v384_v20 = vld [vmem:[#allocation5 + $0x540] sm:$0xff] }
  0x7d   : > { %1952 = vmatpush1.bf16.msra.mxu1 %v1951_v57  ;;  %v397_v17 = vld [vmem:[#allocation5 + $0x5a8] sm:$0xff]  ;;  %v1961_v21 = vpack.c.bf16 %v375_v15, %v363_v14  ;;  %v362_v22 = vld [vmem:[#allocation5 + $0x490] sm:$0xff]  ;;  %v396_v25 = vld [vmem:[#allocation5 + $0x5a0] sm:$0xff] }
  0x7e   : > { %1954 = vmatprep.subr.bf16.mxu1 %v1953_v60  ;;  %v374_v23 = vld [vmem:[#allocation5 + $0x4f0] sm:$0xff]  ;;  %v1933_v24 = vpack.c.bf16 %v397_v17, %v385_v16  ;;  %v387_v26 = vld [vmem:[#allocation5 + $0x558] sm:$0xff]  ;;  %v221_v28 = vld [vmem:[#allocation5 + $0x28] sm:$0xff]  ;;  %v1935_v31 = vpack.c.bf16 %v396_v25, %v384_v20 }
  0x7f   : > { %1924 = vmatpush1.bf16.msra.mxu0 %v1923_v58  ;;  %v399_v27 = vld [vmem:[#allocation5 + $0x5b8] sm:$0xff]  ;;  %v233_v29 = vld [vmem:[#allocation5 + $0x88] sm:$0xff]  ;;  %v1963_v30 = vpack.c.bf16 %v374_v23, %v362_v22  ;;  %v220_v32 = vld [vmem:[#allocation5 + $0x20] sm:$0xff] }
  0x80   : > { %1926 = vmatprep.subr.bf16.mxu0 %v1925_v63  ;;  %v1965_v33 = vpack.c.bf16 %v399_v27, %v387_v26  ;;  %v386_v34 = vld [vmem:[#allocation5 + $0x550] sm:$0xff]  ;;  %v1969_v36 = vpack.c.bf16 %v233_v29, %v221_v28  ;;  %v232_v37 = vld [vmem:[#allocation5 + $0x80] sm:$0xff]  ;;  %v223_v38 = vld [vmem:[#allocation5 + $0x38] sm:$0xff] }
  0x81   : > { %1956 = vmatpush1.bf16.msra.mxu1 %v1955_v6  ;;  %v398_v35 = vld [vmem:[#allocation5 + $0x5b0] sm:$0xff]  ;;  %v235_v39 = vld [vmem:[#allocation5 + $0x98] sm:$0xff]  ;;  %v245_v40 = vld [vmem:[#allocation5 + $0xe8] sm:$0xff]  ;;  %v1971_v44 = vpack.c.bf16 %v232_v37, %v220_v32 }
  0x82   : > { %1958 = vmatprep.subr.bf16.mxu1 %v1957_v9  ;;  %v257_v41 = vld [vmem:[#allocation5 + $0x148] sm:$0xff]  ;;  %v2626_v42 = vld [vmem:[%s2613_s30] sm:$0xff]  ;;  %v1967_v43 = vpack.c.bf16 %v398_v35, %v386_v34  ;;  %v244_v45 = vld [vmem:[#allocation5 + $0xe0] sm:$0xff]  ;;  %v2001_v46 = vpack.c.bf16 %v235_v39, %v223_v38 }
  0x83   : > { %1928 = vmatpush1.bf16.msra.mxu0 %v1927_v7  ;;  %v222_v47 = vld [vmem:[#allocation5 + $0x30] sm:$0xff]  ;;  %v1973_v49 = vpack.c.bf16 %v257_v41, %v245_v40  ;;  %v256_v50 = vld [vmem:[#allocation5 + $0x140] sm:$0xff]  ;;  %v247_v51 = vld [vmem:[#allocation5 + $0xf8] sm:$0xff] }
  0x84   : > { %1930 = vmatprep.subr.bf16.mxu0 %v1929_v12  ;;  %v234_v48 = vld [vmem:[#allocation5 + $0x90] sm:$0xff]  ;;  %v259_v52 = vld [vmem:[#allocation5 + $0x158] sm:$0xff]  ;;  %v269_v53 = vld [vmem:[#allocation5 + $0x1a8] sm:$0xff]  ;;  %v1975_v56 = vpack.c.bf16 %v256_v50, %v244_v45 }
  0x85   : > { %1960 = vmatpush1.bf16.msra.mxu1 %v1959_v18  ;;  %v281_v54 = vld [vmem:[#allocation5 + $0x208] sm:$0xff]  ;;  %v2003_v55 = vpack.c.bf16 %v234_v48, %v222_v47  ;;  %v268_v57 = vld [vmem:[#allocation5 + $0x1a0] sm:$0xff]  ;;  %v2005_v58 = vpack.c.bf16 %v259_v52, %v247_v51  ;;  %v246_v59 = vld [vmem:[#allocation5 + $0xf0] sm:$0xff] }
  0x86   : > { %1962 = vmatprep.subr.bf16.mxu1 %v1961_v21  ;;  %v258_v60 = vld [vmem:[#allocation5 + $0x150] sm:$0xff]  ;;  %v1977_v61 = vpack.c.bf16 %v281_v54, %v269_v53  ;;  %v280_v62 = vld [vmem:[#allocation5 + $0x200] sm:$0xff]  ;;  %v271_v63 = vld [vmem:[#allocation5 + $0x1b8] sm:$0xff] }
  0x87   : > { %1932 = vmatpush1.bf16.msra.mxu0 %v1931_v19  ;;  %v283_v1 = vld [vmem:[#allocation5 + $0x218] sm:$0xff]  ;;  %v293_v2 = vld [vmem:[#allocation5 + $0x268] sm:$0xff]  ;;  %v2007_v4 = vpack.c.bf16 %v258_v60, %v246_v59  ;;  %v1979_v5 = vpack.c.bf16 %v280_v62, %v268_v57  ;;  %v292_v6 = vld [vmem:[#allocation5 + $0x260] sm:$0xff] }
  0x88   : > { %1934 = vmatprep.subr.bf16.mxu0 %v1933_v24  ;;  %v305_v3 = vld [vmem:[#allocation5 + $0x2c8] sm:$0xff]  ;;  %v2009_v7 = vpack.c.bf16 %v283_v1, %v271_v63  ;;  %v270_v8 = vld [vmem:[#allocation5 + $0x1b0] sm:$0xff]  ;;  %v304_v11 = vld [vmem:[#allocation5 + $0x2c0] sm:$0xff] }
  0x89   : > { %1964 = vmatpush1.bf16.msra.mxu1 %v1963_v30  ;;  %v282_v9 = vld [vmem:[#allocation5 + $0x210] sm:$0xff]  ;;  %v1981_v10 = vpack.c.bf16 %v305_v3, %v293_v2  ;;  %v295_v12 = vld [vmem:[#allocation5 + $0x278] sm:$0xff]  ;;  %v317_v14 = vld [vmem:[#allocation5 + $0x328] sm:$0xff]  ;;  %v1983_v17 = vpack.c.bf16 %v304_v11, %v292_v6 }
  0x8a   : > { %1966 = vmatprep.subr.bf16.mxu1 %v1965_v33  ;;  %v307_v13 = vld [vmem:[#allocation5 + $0x2d8] sm:$0xff]  ;;  %v329_v15 = vld [vmem:[#allocation5 + $0x388] sm:$0xff]  ;;  %v2011_v16 = vpack.c.bf16 %v282_v9, %v270_v8  ;;  %v316_v18 = vld [vmem:[#allocation5 + $0x320] sm:$0xff] }
  0x8b   : > { %1936 = vmatpush1.bf16.msra.mxu0 %v1935_v31  ;;  %v2013_v19 = vpack.c.bf16 %v307_v13, %v295_v12  ;;  %v294_v20 = vld [vmem:[#allocation5 + $0x270] sm:$0xff]  ;;  %v1985_v22 = vpack.c.bf16 %v329_v15, %v317_v14  ;;  %v328_v23 = vld [vmem:[#allocation5 + $0x380] sm:$0xff]  ;;  %v319_v24 = vld [vmem:[#allocation5 + $0x338] sm:$0xff] }
  0x8c   : > { %1970 = vmatprep.subr.bf16.mxu0 %v1969_v36  ;;  %v306_v21 = vld [vmem:[#allocation5 + $0x2d0] sm:$0xff]  ;;  %v331_v25 = vld [vmem:[#allocation5 + $0x398] sm:$0xff]  ;;  %v341_v26 = vld [vmem:[#allocation5 + $0x3e8] sm:$0xff]  ;;  %v1987_v29 = vpack.c.bf16 %v328_v23, %v316_v18 }
  0x8d   : > { %1968 = vmatpush1.bf16.msra.mxu1 %v1967_v43  ;;  %v353_v27 = vld [vmem:[#allocation5 + $0x448] sm:$0xff]  ;;  %v2015_v28 = vpack.c.bf16 %v306_v21, %v294_v20  ;;  %v340_v30 = vld [vmem:[#allocation5 + $0x3e0] sm:$0xff]  ;;  %v2017_v31 = vpack.c.bf16 %v331_v25, %v319_v24  ;;  %v318_v32 = vld [vmem:[#allocation5 + $0x330] sm:$0xff] }
  0x8e   : > { %537 = vmatmul.mubr.f32.vlgmr.msra.gmra.mrb[0].mxu0 %v2626_v42  ;;  %2002 = vmatprep.subr.bf16.mxu1 %v2001_v46  ;;  %v330_v33 = vld [vmem:[#allocation5 + $0x390] sm:$0xff]  ;;  %v1989_v34 = vpack.c.bf16 %v353_v27, %v341_v26  ;;  %v352_v35 = vld [vmem:[#allocation5 + $0x440] sm:$0xff]  ;;  %v343_v36 = vld [vmem:[#allocation5 + $0x3f8] sm:$0xff] }
  0x8f   : > { %1972 = vmatpush1.bf16.msra.mxu0 %v1971_v44  ;;  %678 = vmatprep.mubr.f32.mxu0 %v2415_v0  ;;  %v355_v37 = vld [vmem:[#allocation5 + $0x458] sm:$0xff]  ;;  %v365_v38 = vld [vmem:[#allocation5 + $0x4a8] sm:$0xff]  ;;  %v2019_v40 = vpack.c.bf16 %v330_v33, %v318_v32  ;;  %v1991_v41 = vpack.c.bf16 %v352_v35, %v340_v30  ;;  %v364_v43 = vld [vmem:[#allocation5 + $0x4a0] sm:$0xff] }
  0x90   : > { %1974 = vmatprep.subr.bf16.mxu0 %v1973_v49  ;;  %608 = vmatmul.mubr.f32.vlgmr.msra.gmra.mrb[0].mxu1 %v2626_v42  ;;  %v377_v39 = vld [vmem:[#allocation5 + $0x508] sm:$0xff]  ;;  %v2021_v44 = vpack.c.bf16 %v355_v37, %v343_v36  ;;  %v342_v45 = vld [vmem:[#allocation5 + $0x3f0] sm:$0xff]  ;;  %v376_v48 = vld [vmem:[#allocation5 + $0x500] sm:$0xff] }
  0x91   : > { %2004 = vmatpush1.bf16.msra.mxu1 %v2003_v55  ;;  %749 = vmatprep.mubr.f32.mxu1 %v2415_v0  ;;  %v354_v46 = vld [vmem:[#allocation5 + $0x450] sm:$0xff]  ;;  %v1993_v47 = vpack.c.bf16 %v377_v39, %v365_v38  ;;  %v367_v49 = vld [vmem:[#allocation5 + $0x4b8] sm:$0xff]  ;;  %v389_v51 = vld [vmem:[#allocation5 + $0x568] sm:$0xff]  ;;  %v1995_v54 = vpack.c.bf16 %v376_v48, %v364_v43 }
  0x92   : > { %2006 = vmatprep.subr.bf16.mxu1 %v2005_v58  ;;  %v379_v50 = vld [vmem:[#allocation5 + $0x518] sm:$0xff]  ;;  %v401_v52 = vld [vmem:[#allocation5 + $0x5c8] sm:$0xff]  ;;  %v2023_v53 = vpack.c.bf16 %v354_v46, %v342_v45  ;;  %v388_v55 = vld [vmem:[#allocation5 + $0x560] sm:$0xff] }
  0x93   : > { %1976 = vmatpush1.bf16.msra.mxu0 %v1975_v56  ;;  %v2025_v56 = vpack.c.bf16 %v379_v50, %v367_v49  ;;  %v366_v57 = vld [vmem:[#allocation5 + $0x4b0] sm:$0xff]  ;;  %v1997_v59 = vpack.c.bf16 %v401_v52, %v389_v51  ;;  %v400_v60 = vld [vmem:[#allocation5 + $0x5c0] sm:$0xff]  ;;  %v403_v62 = vld [vmem:[#allocation5 + $0x5d8] sm:$0xff] }
  0x94   : > { %1978 = vmatprep.subr.bf16.mxu0 %v1977_v61  ;;  %v378_v58 = vld [vmem:[#allocation5 + $0x510] sm:$0xff]  ;;  %v391_v61 = vld [vmem:[#allocation5 + $0x578] sm:$0xff]  ;;  %v225_v63 = vld [vmem:[#allocation5 + $0x48] sm:$0xff]  ;;  %v1999_v3 = vpack.c.bf16 %v400_v60, %v388_v55 }
  0x95   : > { %2008 = vmatpush1.bf16.msra.mxu1 %v2007_v4  ;;  %v237_v1 = vld [vmem:[#allocation5 + $0xa8] sm:$0xff]  ;;  %v2027_v2 = vpack.c.bf16 %v378_v58, %v366_v57  ;;  %v2029_v4 = vpack.c.bf16 %v403_v62, %v391_v61  ;;  %v402_v6 = vld [vmem:[#allocation5 + $0x5d0] sm:$0xff]  ;;  %v224_v8 = vld [vmem:[#allocation5 + $0x40] sm:$0xff] }
  0x96   : > { %2010 = vmatprep.subr.bf16.mxu1 %v2009_v7  ;;  %v2033_v7 = vpack.c.bf16 %v237_v1, %v225_v63  ;;  %v236_v9 = vld [vmem:[#allocation5 + $0xa0] sm:$0xff]  ;;  %v261_v11 = vld [vmem:[#allocation5 + $0x168] sm:$0xff]  ;;  %v227_v55 = vld [vmem:[#allocation5 + $0x58] sm:$0xff] }
  0x97   : > { %1980 = vmatpush1.bf16.msra.mxu0 %v1979_v5  ;;  %v390_v5 = vld [vmem:[#allocation5 + $0x570] sm:$0xff]  ;;  %v2035_v13 = vpack.c.bf16 %v236_v9, %v224_v8  ;;  %v248_v15 = vld [vmem:[#allocation5 + $0x100] sm:$0xff]  ;;  %v273_v18 = vld [vmem:[#allocation5 + $0x1c8] sm:$0xff] }
  0x98   : > { %1982 = vmatprep.subr.bf16.mxu0 %v1981_v10  ;;  %v249_v10 = vld [vmem:[#allocation5 + $0x108] sm:$0xff]  ;;  %v2031_v12 = vpack.c.bf16 %v402_v6, %v390_v5  ;;  %v272_v21 = vld [vmem:[#allocation5 + $0x1c0] sm:$0xff]  ;;  %v226_v57 = vld [vmem:[#allocation5 + $0x50] sm:$0xff] }
  0x99   : > { %2012 = vmatpush1.bf16.msra.mxu1 %v2011_v16  ;;  %v2037_v14 = vpack.c.bf16 %v261_v11, %v249_v10  ;;  %v260_v16 = vld [vmem:[#allocation5 + $0x160] sm:$0xff]  ;;  %v297_v23 = vld [vmem:[#allocation5 + $0x288] sm:$0xff]  ;;  %v251_v60 = vld [vmem:[#allocation5 + $0x118] sm:$0xff] }
  0x9a   : > { %2014 = vmatprep.subr.bf16.mxu1 %v2013_v19  ;;  %v285_v19 = vld [vmem:[#allocation5 + $0x228] sm:$0xff]  ;;  %v296_v27 = vld [vmem:[#allocation5 + $0x280] sm:$0xff]  ;;  %v263_v61 = vld [vmem:[#allocation5 + $0x178] sm:$0xff] }
  0x9b   : > { %1984 = vmatpush1.bf16.msra.mxu0 %v1983_v17  ;;  %v2039_v17 = vpack.c.bf16 %v260_v16, %v248_v15  ;;  %v2041_v20 = vpack.c.bf16 %v285_v19, %v273_v18  ;;  %v309_v25 = vld [vmem:[#allocation5 + $0x2e8] sm:$0xff]  ;;  %v320_v33 = vld [vmem:[#allocation5 + $0x340] sm:$0xff]  ;;  %v2069_v63 = vpack.c.bf16 %v263_v61, %v251_v60  ;;  %v250_v1 = vld [vmem:[#allocation5 + $0x110] sm:$0xff] }
  0x9c   : > { %1986 = vmatprep.subr.bf16.mxu0 %v1985_v22  ;;  %v284_v22 = vld [vmem:[#allocation5 + $0x220] sm:$0xff]  ;;  %v2045_v26 = vpack.c.bf16 %v309_v25, %v297_v23  ;;  %v321_v30 = vld [vmem:[#allocation5 + $0x348] sm:$0xff]  ;;  %v286_v8 = vld [vmem:[#allocation5 + $0x230] sm:$0xff] }
  0x9d   : > { %2016 = vmatpush1.bf16.msra.mxu1 %v2015_v28  ;;  %v2043_v24 = vpack.c.bf16 %v284_v22, %v272_v21  ;;  %v308_v28 = vld [vmem:[#allocation5 + $0x2e0] sm:$0xff]  ;;  %v345_v35 = vld [vmem:[#allocation5 + $0x408] sm:$0xff]  ;;  %v299_v9 = vld [vmem:[#allocation5 + $0x298] sm:$0xff] }
  0x9e   : > { %2018 = vmatprep.subr.bf16.mxu1 %v2017_v31  ;;  %v333_v31 = vld [vmem:[#allocation5 + $0x3a8] sm:$0xff]  ;;  %v344_v39 = vld [vmem:[#allocation5 + $0x400] sm:$0xff]  ;;  %v311_v10 = vld [vmem:[#allocation5 + $0x2f8] sm:$0xff] }
  0x9f   : > { %1988 = vmatpush1.bf16.msra.mxu0 %v1987_v29  ;;  %v2047_v29 = vpack.c.bf16 %v308_v28, %v296_v27  ;;  %v2049_v32 = vpack.c.bf16 %v333_v31, %v321_v30  ;;  %v357_v36 = vld [vmem:[#allocation5 + $0x468] sm:$0xff]  ;;  %v368_v46 = vld [vmem:[#allocation5 + $0x4c0] sm:$0xff]  ;;  %v323_v15 = vld [vmem:[#allocation5 + $0x358] sm:$0xff] }
  0xa0   : > { %1990 = vmatprep.subr.bf16.mxu0 %v1989_v34  ;;  %v332_v34 = vld [vmem:[#allocation5 + $0x3a0] sm:$0xff]  ;;  %v2053_v38 = vpack.c.bf16 %v357_v36, %v345_v35  ;;  %v381_v43 = vld [vmem:[#allocation5 + $0x528] sm:$0xff]  ;;  %v335_v16 = vld [vmem:[#allocation5 + $0x3b8] sm:$0xff] }
  0xa1   : > { %2020 = vmatpush1.bf16.msra.mxu1 %v2019_v40  ;;  %v2051_v37 = vpack.c.bf16 %v332_v34, %v320_v33  ;;  %v356_v40 = vld [vmem:[#allocation5 + $0x460] sm:$0xff]  ;;  %v393_v48 = vld [vmem:[#allocation5 + $0x588] sm:$0xff]  ;;  %v2081_v18 = vpack.c.bf16 %v335_v16, %v323_v15  ;;  %v322_v19 = vld [vmem:[#allocation5 + $0x350] sm:$0xff] }
  0xa2   : > { %2022 = vmatprep.subr.bf16.mxu1 %v2021_v44  ;;  %v2055_v44 = vpack.c.bf16 %v356_v40, %v344_v39  ;;  %v405_v49 = vld [vmem:[#allocation5 + $0x5e8] sm:$0xff]  ;;  %v392_v52 = vld [vmem:[#allocation5 + $0x580] sm:$0xff]  ;;  %v347_v21 = vld [vmem:[#allocation5 + $0x418] sm:$0xff] }
  0xa3   : > { %1992 = vmatpush1.bf16.msra.mxu0 %v1991_v41  ;;  %v369_v41 = vld [vmem:[#allocation5 + $0x4c8] sm:$0xff]  ;;  %v2061_v51 = vpack.c.bf16 %v405_v49, %v393_v48  ;;  %v359_v22 = vld [vmem:[#allocation5 + $0x478] sm:$0xff]  ;;  %v346_v25 = vld [vmem:[#allocation5 + $0x410] sm:$0xff] }
  0xa4   : > { %1994 = vmatprep.subr.bf16.mxu0 %v1993_v47  ;;  %v2057_v45 = vpack.c.bf16 %v381_v43, %v369_v41  ;;  %v380_v47 = vld [vmem:[#allocation5 + $0x520] sm:$0xff]  ;;  %v371_v27 = vld [vmem:[#allocation5 + $0x4d8] sm:$0xff]  ;;  %v370_v31 = vld [vmem:[#allocation5 + $0x4d0] sm:$0xff] }
  0xa5   : > { %2024 = vmatpush1.bf16.msra.mxu1 %v2023_v53  ;;  %v2059_v50 = vpack.c.bf16 %v380_v47, %v368_v46  ;;  %v404_v53 = vld [vmem:[#allocation5 + $0x5e0] sm:$0xff]  ;;  %v383_v28 = vld [vmem:[#allocation5 + $0x538] sm:$0xff] }
  0xa6   : > { %2026 = vmatprep.subr.bf16.mxu1 %v2025_v56  ;;  %v239_v56 = vld [vmem:[#allocation5 + $0xb8] sm:$0xff]  ;;  %v2089_v30 = vpack.c.bf16 %v383_v28, %v371_v27 }
  0xa7   : > { %1996 = vmatpush1.bf16.msra.mxu0 %v1995_v54  ;;  %v2063_v54 = vpack.c.bf16 %v404_v53, %v392_v52  ;;  %v2065_v58 = vpack.c.bf16 %v239_v56, %v227_v55  ;;  %v395_v33 = vld [vmem:[#allocation5 + $0x598] sm:$0xff] }
  0xa8   : > { %1998 = vmatprep.subr.bf16.mxu0 %v1997_v59  ;;  %v238_v59 = vld [vmem:[#allocation5 + $0xb0] sm:$0xff]  ;;  %v407_v34 = vld [vmem:[#allocation5 + $0x5f8] sm:$0xff] }
  0xa9   : > { %2028 = vmatpush1.bf16.msra.mxu1 %v2027_v2  ;;  %v2067_v62 = vpack.c.bf16 %v238_v59, %v226_v57  ;;  %v262_v2 = vld [vmem:[#allocation5 + $0x170] sm:$0xff]  ;;  %v2093_v36 = vpack.c.bf16 %v407_v34, %v395_v33  ;;  %v427_v27 = vld [vmem:[#allocation7 + $0x98] sm:$0xff]  ;;  %v429_v33 = vld [vmem:[#allocation7 + $0xa8] sm:$0xff] }
  0xaa   : > { %2030 = vmatprep.subr.bf16.mxu1 %v2029_v4  ;;  %v287_v4 = vld [vmem:[#allocation5 + $0x238] sm:$0xff]  ;;  %v2071_v5 = vpack.c.bf16 %v262_v2, %v250_v1 }
  0xab   : > { %2000 = vmatpush1.bf16.msra.mxu0 %v1999_v3  ;;  %v275_v3 = vld [vmem:[#allocation5 + $0x1d8] sm:$0xff] }
  0xac   : > { %2034 = vmatprep.subr.bf16.mxu0 %v2033_v7  ;;  %v2073_v6 = vpack.c.bf16 %v287_v4, %v275_v3  ;;  %v274_v7 = vld [vmem:[#allocation5 + $0x1d0] sm:$0xff] }
  0xad   : > { %2032 = vmatpush1.bf16.msra.mxu1 %v2031_v12  ;;  %v2075_v11 = vpack.c.bf16 %v286_v8, %v274_v7  ;;  %v2077_v12 = vpack.c.bf16 %v311_v10, %v299_v9 }
  0xae   : > { %679 = vmatmul.mubr.f32.vlgmr.msra.gmra.mrb[2].mxu0 %v2626_v42  ;;  %2066 = vmatprep.subr.bf16.mxu1 %v2065_v58 }
  0xaf   : > { %2036 = vmatpush1.bf16.msra.mxu0 %v2035_v13  ;;  %820 = vmatprep.mubr.f32.mxu0 %v2415_v0  ;;  %v298_v13 = vld [vmem:[#allocation5 + $0x290] sm:$0xff] }
  0xb0   : > { %2038 = vmatprep.subr.bf16.mxu0 %v2037_v14  ;;  %750 = vmatmul.mubr.f32.vlgmr.msra.gmra.mrb[2].mxu1 %v2626_v42  ;;  %v310_v14 = vld [vmem:[#allocation5 + $0x2f0] sm:$0xff] }
  0xb1   : > { %891 = vmatprep.mubr.f32.mxu1 %v2415_v0  ;;  %2068 = vmatpush1.bf16.msra.mxu1 %v2067_v62 }
  0xb2   : > { %2070 = vmatprep.subr.bf16.mxu1 %v2069_v63 }
  0xb3   : > { %2040 = vmatpush1.bf16.msra.mxu0 %v2039_v17  ;;  %v2079_v17 = vpack.c.bf16 %v310_v14, %v298_v13 }
  0xb4   : > { %2042 = vmatprep.subr.bf16.mxu0 %v2041_v20  ;;  %v334_v20 = vld [vmem:[#allocation5 + $0x3b0] sm:$0xff] }
  0xb5   : > { %2072 = vmatpush1.bf16.msra.mxu1 %v2071_v5  ;;  %v2083_v23 = vpack.c.bf16 %v334_v20, %v322_v19 }
  0xb6   : > { %2074 = vmatprep.subr.bf16.mxu1 %v2073_v6 }
  0xb7   : > { %2044 = vmatpush1.bf16.msra.mxu0 %v2043_v24  ;;  %v2085_v24 = vpack.c.bf16 %v359_v22, %v347_v21  ;;  %v424_v21 = vld [vmem:[#allocation7 + $0x80] sm:$0xff]  ;;  %v425_v22 = vld [vmem:[#allocation7 + $0x88] sm:$0xff] }
  0xb8   : > { %2046 = vmatprep.subr.bf16.mxu0 %v2045_v26  ;;  %v358_v26 = vld [vmem:[#allocation5 + $0x470] sm:$0xff] }
  0xb9   : > { %2076 = vmatpush1.bf16.msra.mxu1 %v2075_v11 }
  0xba   : > { %2078 = vmatprep.subr.bf16.mxu1 %v2077_v12 }
  0xbb   : > { %2048 = vmatpush1.bf16.msra.mxu0 %v2047_v29  ;;  %v2087_v29 = vpack.c.bf16 %v358_v26, %v346_v25  ;;  %v409_v25 = vld [vmem:[#allocation7 + $0x8] sm:$0xff]  ;;  %v426_v26 = vld [vmem:[#allocation7 + $0x90] sm:$0xff] }
  0xbc   : > { %2050 = vmatprep.subr.bf16.mxu0 %v2049_v32  ;;  %v382_v32 = vld [vmem:[#allocation5 + $0x530] sm:$0xff] }
  0xbd   : > { %2080 = vmatpush1.bf16.msra.mxu1 %v2079_v17  ;;  %v2091_v35 = vpack.c.bf16 %v382_v32, %v370_v31  ;;  %v411_v31 = vld [vmem:[#allocation7 + $0x18] sm:$0xff]  ;;  %v428_v32 = vld [vmem:[#allocation7 + $0xa0] sm:$0xff] }
  0xbe   : > { %2082 = vmatprep.subr.bf16.mxu1 %v2081_v18 }
  0xbf   : > { %2052 = vmatpush1.bf16.msra.mxu0 %v2051_v37  ;;  %v394_v37 = vld [vmem:[#allocation5 + $0x590] sm:$0xff] }
  0xc0   : > { %2054 = vmatprep.subr.bf16.mxu0 %v2053_v38  ;;  %v406_v38 = vld [vmem:[#allocation5 + $0x5f0] sm:$0xff] }
  0xc1   : > { %2084 = vmatpush1.bf16.msra.mxu1 %v2083_v23  ;;  %v2095_v39 = vpack.c.bf16 %v406_v38, %v394_v37  ;;  %v408_v23 = vld [vmem:[#allocation7] sm:$0xff]  ;;  %v413_v37 = vld [vmem:[#allocation7 + $0x28] sm:$0xff]  ;;  %v430_v38 = vld [vmem:[#allocation7 + $0xb0] sm:$0xff] }
  0xc2   : > { %2086 = vmatprep.subr.bf16.mxu1 %v2085_v24  ;;  %v2097_v24 = vpack.c.bf16 %v425_v22, %v424_v21  ;;  %v2099_v28 = vpack.c.bf16 %v409_v25, %v408_v23  ;;  %v442_v23 = vld [vmem:[#allocation7 + $0x110] sm:$0xff]  ;;  %v460_v25 = vld [vmem:[#allocation7 + $0x1a0] sm:$0xff] }
  0xc3   : > { %2056 = vmatpush1.bf16.msra.mxu0 %v2055_v44 }
  0xc4   : > { %2058 = vmatprep.subr.bf16.mxu0 %v2057_v45 }
  0xc5   : > { %2088 = vmatpush1.bf16.msra.mxu1 %v2087_v29  ;;  %v2101_v29 = vpack.c.bf16 %v427_v27, %v426_v26  ;;  %v461_v26 = vld [vmem:[#allocation7 + $0x1a8] sm:$0xff] }
  0xc6   : > { %2090 = vmatprep.subr.bf16.mxu1 %v2089_v30  ;;  %v410_v30 = vld [vmem:[#allocation7 + $0x10] sm:$0xff] }
  0xc7   : > { %2060 = vmatpush1.bf16.msra.mxu0 %v2059_v50  ;;  %v2103_v34 = vpack.c.bf16 %v411_v31, %v410_v30  ;;  %v462_v30 = vld [vmem:[#allocation7 + $0x1b0] sm:$0xff]  ;;  %v463_v31 = vld [vmem:[#allocation7 + $0x1b8] sm:$0xff] }
  0xc8   : > { %2062 = vmatprep.subr.bf16.mxu0 %v2061_v51 }
  0xc9   : > { %2092 = vmatpush1.bf16.msra.mxu1 %v2091_v35  ;;  %v2105_v35 = vpack.c.bf16 %v429_v33, %v428_v32  ;;  %v446_v32 = vld [vmem:[#allocation7 + $0x130] sm:$0xff]  ;;  %v447_v33 = vld [vmem:[#allocation7 + $0x138] sm:$0xff] }
  0xca   : > { %2094 = vmatprep.subr.bf16.mxu1 %v2093_v36  ;;  %v412_v36 = vld [vmem:[#allocation7 + $0x20] sm:$0xff] }
  0xcb   : > { %2064 = vmatpush1.bf16.msra.mxu0 %v2063_v54 }
  0xcc   : > { %1865 = vmatprep.subr.mxu0 %v2415_v0 }
  0xcd   : > { %2096 = vmatpush1.bf16.msra.mxu1 %v2095_v39  ;;  %v431_v39 = vld [vmem:[#allocation7 + $0xb8] sm:$0xff] }
  0xce   : > { %821 = vmatmul.mubr.f32.vlgmr.msra.gmra.mrb[4].mxu0 %v2626_v42  ;;  %1870 = vmatprep.subr.mxu1 %v2415_v0 }
  0xcf   : > { %1867 = vmatprep.mubr.msk.f32.mxu0 %vm2416_vm0, %v2415_v0 }
  0xd0   : > { %892 = vmatmul.mubr.f32.vlgmr.msra.gmra.mrb[4].mxu1 %v2626_v42 }
  0xd1   : > { %1872 = vmatprep.mubr.msk.f32.mxu1 %vm2416_vm0, %v2415_v0 }
 0x161   : > { %v538_v40 = vpop.f32.mrb[0].mxu0 }
 0x162   : > { %v540_v41 = vpop.f32.mrb[1].mxu0 }
 0x163   : > { %v609_v43 = vpop.f32.mrb[0].mxu1 }
 0x164   : > { %v611_v44 = vpop.f32.mrb[1].mxu1 }
 0x181   : > { %v680_v45 = vpop.f32.mrb[2].mxu0 }
 0x182   : > { %v682_v46 = vpop.f32.mrb[3].mxu0  ;;  %1866 = vmatpush3.xpose.msra.mxu0 %v680_v45  ;;  %v432_v45 = vld [vmem:[#allocation7 + $0xc0] sm:$0xff] }
 0x183   : > { %1875 = vmatprep.subr.mxu0 %v2415_v0  ;;  %v751_v47 = vpop.f32.mrb[2].mxu1 }
 0x184   : > { %v753_v48 = vpop.f32.mrb[3].mxu1 }
 0x185   : > { %1868 = vmatmul.mubr.f32.vlgmr.msra.gmra.mrb[6].mxu0 %v538_v40  ;;  %v2107_v40 = vpack.c.bf16 %v413_v37, %v412_v36  ;;  %v2143_v36 = vpack.c.bf16 %v447_v33, %v446_v32 }
 0x186   : > { %1876 = vmatpush3.xpose.msra.mxu0 %v682_v46  ;;  %1877 = vmatprep.mubr.msk.f32.mxu0 %vm2416_vm0, %v2415_v0  ;;  %v433_v46 = vld [vmem:[#allocation7 + $0xc8] sm:$0xff] }
 0x187   : > { %1885 = vmatprep.subr.mxu0 %v2415_v0 }
 0x189   : > { %1878 = vmatmul.mubr.f32.vlgmr.msra.gmra.mrb[8].mxu0 %v540_v41  ;;  %v2109_v41 = vpack.c.bf16 %v431_v39, %v430_v38  ;;  %v448_v38 = vld [vmem:[#allocation7 + $0x140] sm:$0xff]  ;;  %v449_v39 = vld [vmem:[#allocation7 + $0x148] sm:$0xff] }
 0x18a   : > { %1886 = vmatpush3.xpose.msra.mxu0 %v751_v47  ;;  %1887 = vmatprep.mubr.msk.f32.mxu0 %vm2416_vm0, %v2415_v0 }
 0x18b   : > { %1895 = vmatprep.subr.mxu0 %v2415_v0 }
 0x18d   : > { %1888 = vmatmul.mubr.f32.vlgmr.msra.gmra.mrb[10].mxu0 %v609_v43  ;;  %v414_v43 = vld [vmem:[#allocation7 + $0x30] sm:$0xff] }
 0x18e   : > { %1896 = vmatpush3.xpose.msra.mxu0 %v753_v48  ;;  %1897 = vmatprep.mubr.msk.f32.mxu0 %vm2416_vm0, %v2415_v0  ;;  %v2113_v48 = vpack.c.bf16 %v433_v46, %v432_v45  ;;  %v467_v46 = vld [vmem:[#allocation7 + $0x1d8] sm:$0xff] }
 0x18f   : > { %2098 = vmatprep.subr.bf16.mxu0 %v2097_v24  ;;  %v443_v24 = vld [vmem:[#allocation7 + $0x118] sm:$0xff] }
 0x190   : > { %v2135_v27 = vpack.c.bf16 %v443_v24, %v442_v23 }
 0x191   : > { %1898 = vmatmul.mubr.f32.vlgmr.msra.gmra.mrb[12].mxu0 %v611_v44  ;;  %v415_v44 = vld [vmem:[#allocation7 + $0x38] sm:$0xff] }
 0x192   : > { %2100 = vmatpush3.bf16.msra.mxu0 %v2099_v28  ;;  %v2111_v47 = vpack.c.bf16 %v415_v44, %v414_v43  ;;  %v2137_v28 = vpack.c.bf16 %v461_v26, %v460_v25  ;;  %v439_v43 = vld [vmem:[#allocation7 + $0xf8] sm:$0xff]  ;;  %v466_v44 = vld [vmem:[#allocation7 + $0x1d0] sm:$0xff] }
 0x193   : > { %2102 = vmatprep.subr.bf16.mxu0 %v2101_v29  ;;  %v444_v29 = vld [vmem:[#allocation7 + $0x120] sm:$0xff] }
 0x196   : > { %2104 = vmatpush3.bf16.msra.mxu0 %v2103_v34  ;;  %v464_v34 = vld [vmem:[#allocation7 + $0x1c0] sm:$0xff] }
 0x197   : > { %2106 = vmatprep.subr.bf16.mxu0 %v2105_v35  ;;  %v465_v35 = vld [vmem:[#allocation7 + $0x1c8] sm:$0xff] }
 0x198   : > { %v2145_v37 = vpack.c.bf16 %v465_v35, %v464_v34 }
 0x19a   : > { %2108 = vmatpush3.bf16.msra.mxu0 %v2107_v40  ;;  %v2147_v40 = vpack.c.bf16 %v449_v39, %v448_v38 }
 0x19b   : > { %2110 = vmatprep.subr.bf16.mxu0 %v2109_v41  ;;  %v438_v41 = vld [vmem:[#allocation7 + $0xf0] sm:$0xff] }
 0x19c   : > { %v2125_v45 = vpack.c.bf16 %v439_v43, %v438_v41 }
 0x19e   : > { %2112 = vmatpush3.bf16.msra.mxu0 %v2111_v47  ;;  %v422_v47 = vld [vmem:[#allocation7 + $0x70] sm:$0xff] }
 0x19f   : > { %2114 = vmatprep.subr.bf16.mxu0 %v2113_v48  ;;  %v423_v48 = vld [vmem:[#allocation7 + $0x78] sm:$0xff] }
 0x1a1   : > { %v822_v42 = vpop.f32.mrb[4].mxu0 }
 0x1a2   : > { %v2653_v49 = vpop.f32.mrb[5].mxu0  ;;  %1871 = vmatpush3.msra.mxu1 %v822_v42  ;;  %v416_v42 = vld [vmem:[#allocation7 + $0x40] sm:$0xff] }
 0x1a3   : > { %1880 = vmatprep.subr.mxu1 %v2415_v0  ;;  %v2676_v19 = vpop.f32.mrb[4].mxu1 }
 0x1a4   : > { %v2678_v20 = vpop.f32.mrb[5].mxu1 }
 0x258   : > { %v964_v50 = vpop.f32.mrb[6].mxu0 }
 0x259   : > { %v1869_v51 = vpop.f32.mrb[7].mxu0  ;;  %v969_v52 = vsel %vm968_vm1, %v964_v50, -inf }
 0x25a   : > { %970 = vmax.xlane.f32.xlu0 %v969_v52  ;;  %v434_v51 = vld [vmem:[#allocation7 + $0xd0] sm:$0xff]  ;;  %v435_v52 = vld [vmem:[#allocation7 + $0xd8] sm:$0xff] }
 0x25c   : > { %v1119_v53 = vpop.f32.mrb[8].mxu0 }
 0x25d   : > { %v1879_v54 = vpop.f32.mrb[9].mxu0  ;;  %v1123_v55 = vsel %vm968_vm1, %v1119_v53, -inf }
 0x25e   : > { %1124 = vmax.xlane.f32.xlu0 %v1123_v55  ;;  %v2117_v54 = vpack.c.bf16 %v435_v52, %v434_v51  ;;  %v418_v55 = vld [vmem:[#allocation7 + $0x50] sm:$0xff]  ;;  %v451_v52 = vld [vmem:[#allocation7 + $0x158] sm:$0xff] }
 0x25f   : > { %v450_v51 = vld [vmem:[#allocation7 + $0x150] sm:$0xff] }
 0x260   : > { %v1273_v56 = vpop.f32.mrb[10].mxu0 }
 0x261   : > { %v1889_v57 = vpop.f32.mrb[11].mxu0  ;;  %v1277_v58 = vsel %vm968_vm1, %v1273_v56, -inf }
 0x262   : > { %1278 = vmax.xlane.f32.xlu1 %v1277_v58  ;;  %v436_v57 = vld [vmem:[#allocation7 + $0xe0] sm:$0xff]  ;;  %v437_v58 = vld [vmem:[#allocation7 + $0xe8] sm:$0xff] }
 0x264   : > { %v1427_v59 = vpop.f32.mrb[12].mxu0 }
 0x265   : > { %v1899_v60 = vpop.f32.mrb[13].mxu0  ;;  %v1431_v61 = vsel %vm968_vm1, %v1427_v59, -inf }
 0x266   : > { %1432 = vmax.xlane.f32.xlu1 %v1431_v61  ;;  %v2121_v60 = vpack.c.bf16 %v437_v58, %v436_v57  ;;  %v420_v61 = vld [vmem:[#allocation7 + $0x60] sm:$0xff]  ;;  %v453_v58 = vld [vmem:[#allocation7 + $0x168] sm:$0xff] }
 0x267   : > { %v452_v57 = vld [vmem:[#allocation7 + $0x160] sm:$0xff] }
 0x2e7   : > { %v971_v62 = vpop.xlane.xlu0 %970 }
 0x2e8   : > { %v972_v63 = vsub.f32 %v964_v50, %v971_v62  ;;  %v417_v50 = vld [vmem:[#allocation7 + $0x48] sm:$0xff] }
 0x2e9   : > { %v421_v62 = vld [vmem:[#allocation7 + $0x68] sm:$0xff] }
 0x2ea   : > { %v973_v1 = vmul.f32 1.442695, %v972_v63  ;;  %v2123_v63 = vpack.c.bf16 %v421_v62, %v420_v61  ;;  %v471_v61 = vld [vmem:[#allocation7 + $0x1f8] sm:$0xff] }
 0x2eb   : > { %v1125_v2 = vpop.xlane.xlu0 %1124 }
 0x2ec   : > { %2234 = vpow2.f32 %v973_v1  ;;  %v1126_v3 = vsub.f32 %v1119_v53, %v1125_v2  ;;  %v2115_v53 = vpack.c.bf16 %v417_v50, %v416_v42  ;;  %v2149_v42 = vpack.c.bf16 %v467_v46, %v466_v44 }
 0x2ed   : > { %v2127_v50 = vpack.c.bf16 %v423_v48, %v422_v47 }
 0x2ee   : > { %v1127_v4 = vmul.f32 1.442695, %v1126_v3  ;;  %2116 = vmatpush3.bf16.msra.mxu0 %v2115_v53  ;;  %v2151_v53 = vpack.c.bf16 %v451_v52, %v450_v51 }
 0x2ef   : > { %v1279_v5 = vpop.xlane.xlu1 %1278  ;;  %2118 = vmatprep.subr.bf16.mxu0 %v2117_v54  ;;  %v468_v54 = vld [vmem:[#allocation7 + $0x1e0] sm:$0xff] }
 0x2f0   : > { %2236 = vpow2.f32 %v1127_v4  ;;  %v1280_v6 = vsub.f32 %v1273_v56, %v1279_v5  ;;  %v419_v56 = vld [vmem:[#allocation7 + $0x58] sm:$0xff] }
 0x2f2   : > { %v1281_v7 = vmul.f32 1.442695, %v1280_v6 }
 0x2f3   : > { %v1433_v8 = vpop.xlane.xlu1 %1432 }
 0x2f4   : > { %2238 = vpow2.f32 %v1281_v7  ;;  %v1434_v9 = vsub.f32 %v1427_v59, %v1433_v8  ;;  %v2119_v59 = vpack.c.bf16 %v419_v56, %v418_v55  ;;  %v469_v55 = vld [vmem:[#allocation7 + $0x1e8] sm:$0xff] }
 0x2f5   : > { %v2153_v56 = vpack.c.bf16 %v469_v55, %v468_v54 }
 0x2f6   : > { %v2660_v10 = vpop.eup %2234  ;;  %v1435_v11 = vmul.f32 1.442695, %v1434_v9  ;;  %2120 = vmatpush3.bf16.msra.mxu0 %v2119_v59  ;;  %v456_v9 = vld [vmem:[#allocation7 + $0x180] sm:$0xff]  ;;  %v2155_v59 = vpack.c.bf16 %v453_v58, %v452_v57 }
 0x2f7   : > { %v975_v12 = vsel %vm968_vm1, %v2660_v10, 0.0  ;;  %2122 = vmatprep.subr.bf16.mxu0 %v2121_v60  ;;  %v470_v60 = vld [vmem:[#allocation7 + $0x1f0] sm:$0xff] }
 0x2f8   : > { %2240 = vpow2.f32 %v1435_v11  ;;  %976 = vadd.xlane.f32.xlu0 %v975_v12  ;;  %v457_v11 = vld [vmem:[#allocation7 + $0x188] sm:$0xff]  ;;  %v2157_v62 = vpack.c.bf16 %v471_v61, %v470_v60 }
 0x2fa   : > { %v2664_v13 = vpop.eup %2236  ;;  %2124 = vmatpush3.bf16.msra.mxu0 %v2123_v63  ;;  %v454_v63 = vld [vmem:[#allocation7 + $0x170] sm:$0xff] }
 0x2fb   : > { %v1129_v14 = vsel %vm968_vm1, %v2664_v13, 0.0  ;;  %2126 = vmatprep.subr.bf16.mxu0 %v2125_v45 }
 0x2fc   : > { %1130 = vadd.xlane.f32.xlu1 %v1129_v14  ;;  %v440_v14 = vld [vmem:[#allocation7 + $0x100] sm:$0xff] }
 0x2fe   : > { %v2668_v15 = vpop.eup %2238  ;;  %2128 = vmatpush3.bf16.msra.mxu0 %v2127_v50 }
 0x2ff   : > { %v1283_v16 = vsel %vm968_vm1, %v2668_v15, 0.0 }
 0x300   : > { %1284 = vadd.xlane.f32.xlu0 %v1283_v16  ;;  %v441_v16 = vld [vmem:[#allocation7 + $0x108] sm:$0xff] }
 0x302   : > { %v2672_v17 = vpop.eup %2240 }
 0x303   : > { %v1437_v18 = vsel %vm968_vm1, %v2672_v17, 0.0 }
 0x304   : > { %1438 = vadd.xlane.f32.xlu1 %v1437_v18  ;;  %v459_v18 = vld [vmem:[#allocation7 + $0x198] sm:$0xff] }
 0x385   : > { %v977_v1 = vpop.xlane.xlu0 %976 }
 0x386   : > { %2242 = vrcp.f32 %v977_v1  ;;  %v455_v1 = vld [vmem:[#allocation7 + $0x178] sm:$0xff] }
 0x389   : > { %v1131_v2 = vpop.xlane.xlu1 %1130 }
 0x38a   : > { %2244 = vrcp.f32 %v1131_v2  ;;  %v2159_v2 = vpack.c.bf16 %v455_v1, %v454_v63 }
 0x38d   : > { %v1285_v3 = vpop.xlane.xlu0 %1284 }
 0x38e   : > { %2246 = vrcp.f32 %v1285_v3 }
 0x390   : > { %v2243_v4 = vpop.eup %2242 }
 0x391   : > { %v979_v5 = vmul.f32 %v2243_v4, %v2660_v10  ;;  %v1439_v6 = vpop.xlane.xlu1 %1438 }
 0x392   : > { %2248 = vrcp.f32 %v1439_v6 }
 0x393   : > { %1873 = vmatmul.mubr.msk.f32.vlgmr.msra.gmra.mrb[6].mxu1 %vm968_vm1, %v979_v5 }
 0x394   : > { %v2245_v7 = vpop.eup %2244  ;;  %1881 = vmatpush3.msra.mxu1 %v2653_v49  ;;  %1882 = vmatprep.mubr.msk.f32.mxu1 %vm2416_vm0, %v2415_v0  ;;  %v2129_v49 = vpack.c.bf16 %v457_v11, %v456_v9 }
 0x395   : > { %v1133_v8 = vmul.f32 %v2245_v7, %v2664_v13  ;;  %1890 = vmatprep.subr.mxu1 %v2415_v0  ;;  %v458_v13 = vld [vmem:[#allocation7 + $0x190] sm:$0xff] }
 0x397   : > { %1883 = vmatmul.mubr.msk.f32.vlgmr.msra.gmra.mrb[8].mxu1 %vm968_vm1, %v1133_v8 }
 0x398   : > { %v2247_v12 = vpop.eup %2246  ;;  %1891 = vmatpush3.msra.mxu1 %v2676_v19  ;;  %1892 = vmatprep.mubr.msk.f32.mxu1 %vm2416_vm0, %v2415_v0  ;;  %v2131_v19 = vpack.c.bf16 %v441_v16, %v440_v14 }
 0x399   : > { %v1287_v10 = vmul.f32 %v2247_v12, %v2668_v15  ;;  %1900 = vmatprep.subr.mxu1 %v2415_v0  ;;  %v2133_v15 = vpack.c.bf16 %v459_v18, %v458_v13 }
 0x39b   : > { %1893 = vmatmul.mubr.msk.f32.vlgmr.msra.gmra.mrb[10].mxu1 %vm968_vm1, %v1287_v10 }
 0x39c   : > { %v2249_v21 = vpop.eup %2248  ;;  %1901 = vmatpush3.msra.mxu1 %v2678_v20  ;;  %1902 = vmatprep.mubr.msk.f32.mxu1 %vm2416_vm0, %v2415_v0  ;;  %v445_v20 = vld [vmem:[#allocation7 + $0x128] sm:$0xff] }
 0x39d   : > { %v1441_v22 = vmul.f32 %v2249_v21, %v2672_v17  ;;  %2130 = vmatprep.subr.bf16.mxu1 %v2129_v49  ;;  %v2139_v0 = vpack.c.bf16 %v445_v20, %v444_v29  ;;  %v2141_v17 = vpack.c.bf16 %v463_v31, %v462_v30 }
 0x39f   : > { %1903 = vmatmul.mubr.msk.f32.vlgmr.msra.gmra.mrb[12].mxu1 %vm968_vm1, %v1441_v22 }
 0x3a0   : > { %2132 = vmatpush3.bf16.msra.mxu1 %v2131_v19 }
 0x3a1   : > { %2134 = vmatprep.subr.bf16.mxu1 %v2133_v15 }
 0x3a4   : > { %2136 = vmatpush3.bf16.msra.mxu1 %v2135_v27 }
 0x3a5   : > { %2138 = vmatprep.subr.bf16.mxu1 %v2137_v28 }
 0x3a8   : > { %2140 = vmatpush3.bf16.msra.mxu1 %v2139_v0 }
 0x3a9   : > { %2142 = vmatprep.subr.bf16.mxu1 %v2141_v17 }
 0x3ac   : > { %2144 = vmatpush3.bf16.msra.mxu1 %v2143_v36 }
 0x3ad   : > { %2146 = vmatprep.subr.bf16.mxu1 %v2145_v37 }
 0x3b0   : > { %2148 = vmatpush3.bf16.msra.mxu1 %v2147_v40 }
 0x3b1   : > { %2150 = vmatprep.subr.bf16.mxu1 %v2149_v42 }
 0x3b4   : > { %2152 = vmatpush3.bf16.msra.mxu1 %v2151_v53 }
 0x3b5   : > { %2154 = vmatprep.subr.bf16.mxu1 %v2153_v56 }
 0x3b8   : > { %2156 = vmatpush3.bf16.msra.mxu1 %v2155_v59 }
 0x3b9   : > { %2158 = vmatprep.subr.bf16.mxu1 %v2157_v62 }
 0x3bc   : > { %2160 = vmatpush3.bf16.msra.mxu1 %v2159_v2 }
 0x466   : > { %v1049_v3 = vpop.f32.mrb[6].mxu1 }
 0x467   : > { %v1874_v4 = vpop.f32.mrb[7].mxu1 }
 0x46a   : > { %v1203_v5 = vpop.f32.mrb[8].mxu1 }
 0x46b   : > { %v1884_v6 = vpop.f32.mrb[9].mxu1  ;;  %1579 = vmatprep.mubr.f32.mxu0 %v1203_v5 }
 0x46c   : > { %1580 = vmatmul.mubr.f32.vlgmr.msra.gmra.mrb[14].mxu0 %v1049_v3 }
 0x46e   : > { %v1357_v7 = vpop.f32.mrb[10].mxu1 }
 0x46f   : > { %v1894_v8 = vpop.f32.mrb[11].mxu1 }
 0x472   : > { %v1511_v9 = vpop.f32.mrb[12].mxu1 }
 0x473   : > { %v1904_v11 = vpop.f32.mrb[13].mxu1  ;;  %1649 = vmatprep.mubr.f32.mxu1 %v1511_v9 }
 0x474   : > { %1650 = vmatmul.mubr.f32.vlgmr.msra.gmra.mrb[14].mxu1 %v1357_v7 }
 0x53f   : > { %v1827_v12 = vpop.f32.mrb[14].mxu0 }
 0x540   : > { %v1828_v10 = vpop.f32.mrb[15].mxu0 }
 0x541   : > { %v1829_v49 = vadd.f32 %v1828_v10, %v1827_v12 }
 0x547   : > { %v1862_v14 = vpop.f32.mrb[14].mxu1 }
 0x548   : > { %v1863_v16 = vpop.f32.mrb[15].mxu1 }
 0x549   : > { %v1864_v13 = vadd.f32 %v1863_v16, %v1862_v14 }
 0x54b   : > { %v1652_v18 = vadd.f32 %v1864_v13, %v1829_v49 }
 0x54d   : > { %1655 = vst [vmem:[%s214_s20] sm:$0xff] %v1652_v18 }
 0x54e   : > { %2349 = shalt.err (!%p2346_p2)
}
 0x54f   : > { %s2350_s23 = scalar_lea.hbm %s2705_s22, 128  ;;  %s2354_s17 = scalar_lea.hbm %s2752_s3, 256 }
 0x550   : > { %p2351_p13 = scmp.ne.s32.totalorder %s2705_s22, %s2350_s23  ;;  %p2355_p4 = scmp.lt.u32.totalorder %s2705_s22, %s2752_s3 }
 0x551   : > { %p2356_p7 = scmp.lt.u32.totalorder %s2354_s17, %s2350_s23  ;;  %p2358_p11 = scmp.lt.u32.totalorder %s2350_s23, %s2705_s22 }
 0x552   : > { %p2352_p6 = pnand %p2351_p13, %p2766_p0 }
 0x553   : > { %p2357_p8 = por %p2356_p7, %p2355_p4 }
 0x554   : > { %p2353_p10 = pneg %p2352_p6 }
 0x555   : > { %p2359_p1 = por %p2358_p11, %p2357_p8 }
 0x557   : > { %p2360_p3 = pnand %p2359_p1, %p2353_p10 }
 0x559   : > { %2363 = shalt.err (!%p2360_p3)
}
 0x55a   : > { %2171 = dma.vmem_to_hbm [thread:$0]  (%p2766_p0), %s2707_s24, 128, %s2705_s22, %s1657_s4  }
 0x55b PF: > { %s1682_s29 = sand.u32 1, %s2394_s12   ;;  %p2767_p5 = scmp.ne.s32.totalorder %s2757_s19, 0 }
 0x55c   : > { %p2768_p9 = scmp.ge.s32.totalorder %s2406_s15, 2  ;;  %s1683_s30 = scalar_lea.sflag [#allocation4], %s1682_s29 }
 0x55e   : > { %p2185_p12 = pnand %p2768_p9, %p2767_p5 }
 0x560   : > { %2389 = dma.done.wait (!%p2185_p12), %s1683_s30, 128  }
 0x561   : > { %2391 = vsyncadd (!%p2185_p12), %s1683_s30, 4294967168  ;;  %p17_p2 = scmp.ge.s32.totalorder %s2548_s6, 4   ;;  %s2769_s12 = smov %s2398_s13 }
 0x562   : > { %s2770_s13 = smov %s2402_s14  ;;  %s2771_s14 = smov %s2557_s9 }
 0x563   : > { %s2772_s15 = smov %s2548_s6  ;;  %19 = sbr.rel (!%p17_p2) target bundleno = 6 (0x6), region = 85 }
 0x56a   :  { %1688 = vsyncpa [#allocation3], 1 }
 0x56b   :  { %1690 = vsyncpa [#allocation3 + $0x1], 1 }
 0x56c   :  { %1691 = vsyncpa [#allocation6], 1 }
 0x56d   :  { %1692 = vsyncpa [#allocation4], 1 }
 0x56e   :  { %1694 = vsyncpa [#allocation4 + $0x1], 1 }

</bundles_post_ra>
